<compile_context>
chip_gen: v7x
topology: tpu7x:2x2x1
jax: 0.10.0
libtpu: 0.0.40
codegen_flags: <defaults>
</compile_context>

<pallas_src>
import jax
import jax.numpy as jnp
from jax.experimental import pallas as pl
from jax.experimental.pallas import tpu as pltpu

HIDDEN = 768        # BLIP text hidden size implied by MLP(768) / view(-1,1,1,768)
KH, KW = 18, 24     # ConvTranspose2d kernel == stride
LANES = 384         # lcm(KW, 128): minimal fully-dense lane width containing whole K rows
Q_ROWS = HIDDEN * KW // LANES   # 48 — sublane dim, multiple of 8


# --------------------------------------------------------------------------
# Fused Pallas kernel: collapsed MLP reward head + MiniUpsamplingNetwork
# --------------------------------------------------------------------------
def _fused_head_kernel(scalars_ref, x_row_ref, w_row_ref, xrep_ref, kbig_ref,
                       up_ref, score_ref):
    b_eff = scalars_ref[0]     # collapsed MLP bias (SMEM scalar)
    conv_b = scalars_ref[1]    # ConvTranspose2d bias (SMEM scalar)

    # ---- MLP reward head (collapsed, Dropout == identity in eval forward) ----
    # score = x . W_eff + b_eff : lane-axis reduce over 6 dense vregs (XLU slot).
    score_ref[...] = (
        jnp.sum(x_row_ref[...] * w_row_ref[...], axis=-1, keepdims=True) + b_eff
    )

    # ---- MiniUpsamplingNetwork (ConvTranspose2d, stride == kernel) ----
    # up[h, q, m] = x[q*16 + m//24] * K[h, m%24] + bias, emitted in the exact
    # contiguous flat order of torch's conv output (h*18432 + w*24 + kw), so the
    # wrapper's reshape to (1,768,18,24) matches torch's .view bit-for-bit.
    # Pure dense VPU broadcast-FMA: 324 unmasked vreg stores, zero VMEM padding.
    kb = kbig_ref[...]                                   # (18, 384)
    xr = xrep_ref[...]                                   # (48, 384)
    up_ref[...] = kb[:, None, :] * xr[None, :, :] + conv_b   # (18, 48, 384)


def saliency_heads_forward(txt_features, w_eff, b_eff, k_big, conv_b):
    """Fused forward of the module-owned heads.

    txt_features: (1, 768) float32   (B must be 1, as torch's view(1,768,18,24) requires)
    w_eff, b_eff: collapsed MLP parameters (768,1)/(768,) and scalar-like
    k_big:        (18, 384) pre-tiled conv weight (from prepare_upsample_params)
    conv_b:       scalar ConvTranspose2d bias
    returns: (upsampled (1, 768, 18, 24), score (1, 1))
    """
    assert txt_features.shape == (1, HIDDEN), "module hard-codes batch size 1"

    x_row = txt_features.reshape(1, HIDDEN).astype(jnp.float32)       # lane-dense row
    w_row = jnp.asarray(w_eff, jnp.float32).reshape(1, HIDDEN)        # lane-dense row
    scalars = jnp.stack([
        jnp.asarray(b_eff, jnp.float32).reshape(()),
        jnp.asarray(conv_b, jnp.float32).reshape(()),
    ])                                                                # (2,) -> SMEM

    # Layout plumbing (73 KB): repeat-interleave x by 24 so the kernel's upsample
    # is a dense broadcast with no cross-lane gathers.  x_rep[q, m] = x[q*16 + m//24].
    x_rep = jnp.repeat(x_row.reshape(HIDDEN), KW).reshape(Q_ROWS, LANES)

    vmem = pl.BlockSpec(memory_space=pltpu.MemorySpace.VMEM)
    smem = pl.BlockSpec(memory_space=pltpu.MemorySpace.SMEM)

    up3, score = pl.pallas_call(
        _fused_head_kernel,
        out_shape=(
            jax.ShapeDtypeStruct((KH, Q_ROWS, LANES), jnp.float32),   # upsample, torch flat order
            jax.ShapeDtypeStruct((1, 1), jnp.float32),                # MLP score
        ),
        in_specs=[smem, vmem, vmem, vmem, vmem],
        out_specs=(vmem, vmem),
    )(scalars, x_row, w_row, x_rep, k_big)

    # (18,48,384) row-major flat order == torch's contiguous conv buffer
    # (h*18432 + w*24 + kw), so this reshape is metadata-only — identical
    # reinterpretation to torch's .view(1,768,18,24).
    return up3.reshape(1, HIDDEN, KH, KW), score


# --------------------------------------------------------------------------
# One-time parameter-load-time preparation
# --------------------------------------------------------------------------
def collapse_mlp(params):
    """params: flat list [w1,b1,...,w5,b5], w:(in,out), b:(1,out).

    Returns (w_eff (768,1), b_eff (1,1)).  Valid only in eval mode: the MLP has
    no activations and Dropout is identity in the forward pass.
    """
    w_eff = params[0].astype(jnp.float32)
    b_eff = params[1].astype(jnp.float32)
    for i in range(1, 5):
        w = params[2 * i].astype(jnp.float32)
        b = params[2 * i + 1].astype(jnp.float32)
        w_eff = w_eff @ w
        b_eff = b_eff @ w + b
    return w_eff, b_eff


def prepare_upsample_params(conv_w):
    """Tile the (18,24) ConvTranspose2d kernel to a dense (18, 384) slab:
    k_big[h, m] = conv_w[h, m % 24].  Done once at parameter-load time."""
    return jnp.tile(jnp.asarray(conv_w, jnp.float32).reshape(KH, KW),
                    (1, LANES // KW))


# --------------------------------------------------------------------------
# Deterministic synthetic parameter init (shapes / init from the module)
# --------------------------------------------------------------------------
def init_params():
    key = jax.random.PRNGKey(1234)
    sizes = [HIDDEN, 1024, 128, 64, 16, 1]
    std = 1.0 / (HIDDEN + 1)  # nn.init.normal_(std=1/(input_size+1)), bias = 0
    mlp_params = []
    for i in range(5):
        key, sub = jax.random.split(key)
        w = std * jax.random.normal(sub, (sizes[i], sizes[i + 1]), dtype=jnp.float32)
        b = jnp.zeros((1, sizes[i + 1]), dtype=jnp.float32)
        mlp_params += [w, b]

    key, k1, k2 = jax.random.split(key, 3)
    conv_w = 0.05 * jax.random.normal(k1, (KH, KW), dtype=jnp.float32)  # (1,1,18,24) squeezed
    conv_b = 0.05 * jax.random.normal(k2, (), dtype=jnp.float32)
    return mlp_params, conv_w, conv_b


# --------------------------------------------------------------------------
# Pure-JAX references for correctness checking
# --------------------------------------------------------------------------
def mlp_ref(x, params):
    h = x
    for i in range(5):
        h = h @ params[2 * i] + params[2 * i + 1]
    return h


def upsample_ref(x, conv_w, conv_b):
    # Contiguous ConvTranspose2d output (18, 18432) == (18,768,24), then the
    # same raw reinterpretation torch's .view(1,768,18,24) performs.
    kH, kW = conv_w.shape
    out3 = x.reshape(HIDDEN)[None, :, None] * conv_w[:, None, :] + conv_b  # (18,768,24)
    return out3.reshape(1, HIDDEN, kH, kW)


if __name__ == "__main__":
    mlp_params, conv_w, conv_b = init_params()
    # One-time (parameter-load-time) preparation.
    w_eff, b_eff = collapse_mlp(mlp_params)
    k_big = prepare_upsample_params(conv_w)

    # Stand-in for text_output.last_hidden_state[:, 0, :] (BLIP CLS token).
    txt_features = jax.random.normal(jax.random.PRNGKey(0), (1, HIDDEN), dtype=jnp.float32)

    up, score = saliency_heads_forward(txt_features, w_eff, b_eff, k_big, conv_b)
    jax.block_until_ready((up, score))

    up_r = upsample_ref(txt_features, conv_w, conv_b)
    sc_r = mlp_ref(txt_features, mlp_params)

    assert up.shape == (1, HIDDEN, KH, KW)
    assert score.shape == (1, 1)
    assert jnp.allclose(up, up_r, atol=1e-5, rtol=1e-5)
    assert jnp.allclose(score, sc_r, atol=1e-5, rtol=1e-3)

    print("KERNEL_OK")
</pallas_src>

<mosaic_0001>
module attributes {stable_mosaic.version = 11 : i64} {
  func.func @_fused_head_kernel(%arg0: memref<2xf32, #tpu.memory_space<smem>>, %arg1: memref<1x768xf32, #tpu.memory_space<vmem>>, %arg2: memref<1x768xf32, #tpu.memory_space<vmem>>, %arg3: memref<48x384xf32, #tpu.memory_space<vmem>>, %arg4: memref<18x384xf32, #tpu.memory_space<vmem>>, %arg5: memref<18x48x384xf32, #tpu.memory_space<vmem>>, %arg6: memref<1x1xf32, #tpu.memory_space<vmem>>) attributes {dimension_semantics = [], scalar_prefetch = 0 : i64, scratch_operands = 0 : i64, tpu.core_type = #tpu.core_type<tc>} {
    %c0 = arith.constant 0 : index
    %0 = memref.load %arg0[%c0] : memref<2xf32, #tpu.memory_space<smem>>
    %c1 = arith.constant 1 : index
    %1 = memref.load %arg0[%c1] : memref<2xf32, #tpu.memory_space<smem>>
    %c0_0 = arith.constant 0 : index
    %c0_1 = arith.constant 0 : index
    %2 = vector.load %arg1[%c0_0, %c0_1] : memref<1x768xf32, #tpu.memory_space<vmem>>, vector<1x768xf32>
    %c0_2 = arith.constant 0 : index
    %c0_3 = arith.constant 0 : index
    %3 = vector.load %arg2[%c0_2, %c0_3] : memref<1x768xf32, #tpu.memory_space<vmem>>, vector<1x768xf32>
    %4 = arith.mulf %2, %3 : vector<1x768xf32>
    %cst = arith.constant dense<0.000000e+00> : vector<1xf32>
    %5 = vector.multi_reduction <add>, %4, %cst [1] : vector<1x768xf32> to vector<1xf32>
    %6 = vector.shape_cast %5 : vector<1xf32> to vector<1x1xf32>
    %7 = vector.broadcast %0 : f32 to vector<1x1xf32>
    %8 = arith.addf %6, %7 : vector<1x1xf32>
    %c0_4 = arith.constant 0 : index
    %c0_5 = arith.constant 0 : index
    %9 = vector.load %arg6[%c0_4, %c0_5] : memref<1x1xf32, #tpu.memory_space<vmem>>, vector<1x1xf32>
    tpu.vector_store %arg6[%c0_4, %c0_5], %8 {strides = array<i32>} : memref<1x1xf32, #tpu.memory_space<vmem>>, vector<1x1xf32>,
    %c0_6 = arith.constant 0 : index
    %c0_7 = arith.constant 0 : index
    %10 = vector.load %arg4[%c0_6, %c0_7] : memref<18x384xf32, #tpu.memory_space<vmem>>, vector<18x384xf32>
    %c0_8 = arith.constant 0 : index
    %c0_9 = arith.constant 0 : index
    %11 = vector.load %arg3[%c0_8, %c0_9] : memref<48x384xf32, #tpu.memory_space<vmem>>, vector<48x384xf32>
    %12 = vector.shape_cast %10 : vector<18x384xf32> to vector<18x1x384xf32>
    %13 = vector.shape_cast %11 : vector<48x384xf32> to vector<1x48x384xf32>
    %14 = vector.broadcast %12 : vector<18x1x384xf32> to vector<18x48x384xf32>
    %15 = vector.broadcast %13 : vector<1x48x384xf32> to vector<18x48x384xf32>
    %16 = arith.mulf %14, %15 : vector<18x48x384xf32>
    %17 = vector.broadcast %1 : f32 to vector<18x48x384xf32>
    %18 = arith.addf %16, %17 : vector<18x48x384xf32>
    %c0_10 = arith.constant 0 : index
    %c0_11 = arith.constant 0 : index
    %c0_12 = arith.constant 0 : index
    %19 = vector.load %arg5[%c0_10, %c0_11, %c0_12] : memref<18x48x384xf32, #tpu.memory_space<vmem>>, vector<18x48x384xf32>
    tpu.vector_store %arg5[%c0_10, %c0_11, %c0_12], %18 {strides = array<i32>} : memref<18x48x384xf32, #tpu.memory_space<vmem>>, vector<18x48x384xf32>,
    return
  }
}

</mosaic_0001>

<bundles_post_ra>
// kernel: tpu_custom_call.1
= control target key start
LH: loop header
LB: loop body
LE: loop exit
PB: predicated region body
PF: predicated region fallthrough
CT: control target
= control target key end

     0   :  { %12 = vsyncpa [#allocation5], 0  ;;  %s4101_s0 = inlined_call_operand.hbm [shape: f32[2], index: 0, kind: input, shape index: {}]   ;;  %s4102_s1 = inlined_call_operand.hbm [shape: f32[1,768], index: 1, kind: input, shape index: {}]   ;;  %s4103_s2 = inlined_call_operand.hbm [shape: f32[1,768], index: 2, kind: input, shape index: {}]   ;;  %s4104_s3 = inlined_call_operand.hbm [shape: f32[48,384], index: 3, kind: input, shape index: {}]   ;;  %s4105_s4 = inlined_call_operand.hbm [shape: f32[18,384], index: 4, kind: input, shape index: {}]   ;;  %s4106_s5 = inlined_call_operand.hbm [shape: f32[18,48,384], index: 5, kind: output, shape index: {0}]   ;;  %s4107_s6 = inlined_call_operand.hbm [shape: f32[1,1], index: 6, kind: output, shape index: {1}]  }
   0x1   :  { %13 = vsyncpa [#allocation3], 0 }
   0x2   :  { %14 = vsyncpa [#allocation8], 0 }
   0x3   :  { %15 = vsyncpa [#allocation11], 0 }
   0x4   :  { %16 = vsyncpa [#allocation4], 0 }
   0x5   :  { %17 = vsyncpa [#allocation14], 0  ;;  %s1793_s21 = smov [#allocation7]   ;;  %s1794_s23 = smov [#allocation6]  }
   0x6   :  { %s42_s22 = sshll.u32 %s1793_s21, 4  ;;  %s32_s24 = sshll.u32 %s1794_s23, 4  ;;  %s43_s22 = int_to_ptr.vmem [resolvable:$true] %s42_s22  ;;  %s33_s24 = int_to_ptr.vmem [resolvable:$true] %s32_s24 }
   0x7   :  { %s1639_s27 = scalar_lea.hbm %s4103_s2, 96 }
   0x8   :  { %p1640_p0 = scmp.ne.s32.totalorder %s4103_s2, %s1639_s27  ;;  %p1643_p1 = scmp.lt.u32.totalorder %s1639_s27, %s4103_s2 }
   0xa   :  { %p1645_p2 = pnand %p1643_p1, %p1640_p0 }
   0xc   :  { %1648 = shalt.err (!%p1645_p2)
}
   0xd   :  { %s1649_s8 = scalar_lea.vmem %s43_s22, 96  ;;  %p1654_p4 = scmp.lt.s32.totalorder %s43_s22, %s43_s22 }
   0xe   :  { %p1650_p3 = scmp.ne.s32.totalorder %s43_s22, %s1649_s8  ;;  %p1655_p5 = scmp.lt.s32.totalorder %s1649_s8, %s1649_s8 }
  0x10   :  { %p1656_p6 = por %p1655_p5, %p1654_p4 }
  0x12   :  { %p1657_p7 = pnand %p1656_p6, %p1650_p3 }
  0x14   :  { %1660 = shalt.err (!%p1657_p7)
}
  0x15   :  { %45 = dma.hbm_to_vmem [thread:$0]  %s4103_s2, 96, %s43_s22, [#allocation8]  }
  0x16   :  { %s1661_s13 = scalar_lea.hbm %s4101_s0, 16 }
  0x17   :  { %p1662_p8 = scmp.ne.s32.totalorder %s4101_s0, %s1661_s13  ;;  %p1665_p9 = scmp.lt.u32.totalorder %s1661_s13, %s4101_s0 }
  0x19   :  { %p1667_p10 = pnand %p1665_p9, %p1662_p8 }
  0x1b   :  { %1670 = shalt.err (!%p1667_p10)
}
  0x1c   :  { %s1795_s18 = smov [#allocation2]   ;;  %s1671_s22 = scalar_lea.hbm %s4102_s1, 96 }
  0x1d   :  { %25 = dma.hbm_to_smem %s4101_s0, 16, %s1795_s18, [#allocation5]  }
  0x1e   :  { %p1672_p11 = scmp.ne.s32.totalorder %s4102_s1, %s1671_s22  ;;  %p1675_p12 = scmp.lt.u32.totalorder %s1671_s22, %s4102_s1 }
  0x20   :  { %p1677_p13 = pnand %p1675_p12, %p1672_p11 }
  0x22   :  { %1680 = shalt.err (!%p1677_p13)
}
  0x23   :  { %s1681_s28 = scalar_lea.vmem %s33_s24, 96  ;;  %p1686_p1 = scmp.lt.s32.totalorder %s33_s24, %s33_s24 }
  0x24   :  { %p1682_p0 = scmp.ne.s32.totalorder %s33_s24, %s1681_s28  ;;  %p1687_p2 = scmp.lt.s32.totalorder %s1681_s28, %s1681_s28 }
  0x26   :  { %p1688_p3 = por %p1687_p2, %p1686_p1 }
  0x28   :  { %p1689_p4 = pnand %p1688_p3, %p1682_p0 }
  0x2a   :  { %1692 = shalt.err (!%p1689_p4)
}
  0x2b   :  { %35 = dma.hbm_to_vmem [thread:$0]  %s4102_s1, 96, %s33_s24, [#allocation3]  }
  0x2c   :  { %s1796_s30 = smov [#allocation9]   ;;  %s1693_s10 = scalar_lea.hbm %s4104_s3, 2304 }
  0x2d   :  { %s51_s7 = sshll.u32 %s1796_s30, 4  ;;  %p1694_p5 = scmp.ne.s32.totalorder %s4104_s3, %s1693_s10  ;;  %s52_s7 = int_to_ptr.vmem [resolvable:$true] %s51_s7 }
  0x2e   :  { %p1697_p6 = scmp.lt.u32.totalorder %s1693_s10, %s4104_s3 }
  0x30   :  { %p1699_p7 = pnand %p1697_p6, %p1694_p5 }
  0x32   :  { %1702 = shalt.err (!%p1699_p7)
}
  0x33   :  { %s1703_s15 = scalar_lea.vmem %s52_s7, 2304  ;;  %p1708_p9 = scmp.lt.s32.totalorder %s52_s7, %s52_s7 }
  0x34   :  { %p1704_p8 = scmp.ne.s32.totalorder %s52_s7, %s1703_s15  ;;  %p1709_p10 = scmp.lt.s32.totalorder %s1703_s15, %s1703_s15 }
  0x36   :  { %p1710_p11 = por %p1709_p10, %p1708_p9 }
  0x38   :  { %p1711_p12 = pnand %p1710_p11, %p1704_p8 }
  0x3a   :  { %1714 = shalt.err (!%p1711_p12)
}
  0x3b   :  { %s1797_s1 = smov 384   ;;  %s1798_s24 = smov 24  }
  0x3c   :  { %57 = dma.hbm_to_vmem [thread:$0]  %s4104_s3, 2304, %s52_s7, [#allocation8], %s1797_s1, %s1797_s1, %s1798_s24  }
  0x3d   :  { %s1799_s18 = smov [#allocation10]   ;;  %s1715_s21 = scalar_lea.hbm %s4105_s4, 1152 }
  0x3e   :  { %s63_s19 = sshll.u32 %s1799_s18, 4  ;;  %p1716_p13 = scmp.ne.s32.totalorder %s4105_s4, %s1715_s21  ;;  %s64_s19 = int_to_ptr.vmem [resolvable:$true] %s63_s19 }
  0x3f   :  { %p1719_p0 = scmp.lt.u32.totalorder %s1715_s21, %s4105_s4 }
  0x41   :  { %p1721_p1 = pnand %p1719_p0, %p1716_p13 }
  0x43   :  { %1724 = shalt.err (!%p1721_p1)
}
  0x44   :  { %s1725_s27 = scalar_lea.vmem %s64_s19, 1152  ;;  %p1730_p3 = scmp.lt.s32.totalorder %s64_s19, %s64_s19 }
  0x45   :  { %p1726_p2 = scmp.ne.s32.totalorder %s64_s19, %s1725_s27  ;;  %p1731_p4 = scmp.lt.s32.totalorder %s1725_s27, %s1725_s27 }
  0x47   :  { %p1732_p5 = por %p1731_p4, %p1730_p3 }
  0x49   :  { %p1733_p6 = pnand %p1732_p5, %p1726_p2 }
  0x4b   :  { %1736 = shalt.err (!%p1733_p6)
}
  0x4c   :  { %69 = dma.hbm_to_vmem [thread:$0]  %s4105_s4, 1152, %s64_s19, [#allocation11], %s1797_s1, %s1797_s1, %s1798_s24  }
  0x4d   :  { %1781 = dma.done.wait [#allocation5], 16  }
  0x4e   :  { %1782 = vsyncadd [#allocation5], 4294967280 }
  0x4f   :  { %1783 = dma.done.wait [#allocation3], 96  }
  0x50   :  { %1784 = vsyncadd [#allocation3], 4294967200 }
  0x51   :  { %1785 = dma.done.wait [#allocation8], 2400  }
  0x52   :  { %1786 = vsyncadd [#allocation8], 4294964896 }
  0x53   :  { %1787 = dma.done.wait [#allocation11], 1152  }
  0x54   :  { %1788 = vsyncadd [#allocation11], 4294966144 }
  0x55   :  { %85 = sfence }
  0x56   :  { %v88_v0 = vld [vmem:[#allocation6] sm:$0x3f]  ;;  %v92_v1 = vlaneseq  ;;  %v89_v2 = vld [vmem:[#allocation7] sm:$0x3f]  ;;  %vm122_vm0 = vcmask 1040384   ;;  %v142_v31 = vld [vmem:[#allocation10 + $0x10] sm:$0xff] }
  0x57   :  { %v90_v3 = vmul.f32 %v89_v2, %v88_v0  ;;  %v1800_v27 = vmov 1966171168   ;;  %v145_v32 = vld [vmem:[#allocation10 + $0x28] sm:$0xff]  ;;  %v178_v35 = vcombine.high %v142_v31, %v142_v31  ;;  %v1634_v37 = vld [vmem:[#allocation10 + $0x18] ss:$8 sps:$4 sm:$0xff]   ;;  %s1976_s4 = sld [smem:[#allocation2]] }
  0x58   :  { %v93_v4 = vshrl.u32 %v92_v1, 7  ;;  %v180_v28 = vunpack.c.l.s4 %v1800_v27  ;;  %v1630_v33 = vld [vmem:[#allocation10] ss:$8 sps:$4 sm:$0xff]   ;;  %v1632_v34 = vld [vmem:[#allocation10 + $0x4] ss:$8 sps:$4 sm:$0xff]   ;;  %v245_v38 = vcombine.high %v145_v32, %v145_v32  ;;  %s3270_s0 = sld [smem:[#allocation2 + $0x1]] }
  0x59   :  { %v1636_v39 = vld [vmem:[#allocation10 + $0x1c] ss:$8 sps:$4 sm:$0xff]   ;;  %v1638_v60 = vld [vmem:[#allocation10 + $0x30] ss:$8 sps:$4 sm:$0x33]   ;;  %vm138_vm1 = vcmask 0  }
  0x5a   :  { %v1904_v5 = vsub.s32 0, %v93_v4  ;;  %v1906_v6 = vsub.s32 1, %v93_v4  ;;  %v1908_v7 = vsub.s32 2, %v93_v4  ;;  %v106_v8 = vsub.s32 3, %v93_v4  ;;  %s1801_s29 = smov [#allocation13]  }
  0x5b   :  { %v110_v9 = vsub.s32 4, %v93_v4  ;;  %v114_v10 = vsub.s32 5, %v93_v4  ;;  %v181_v30 = vunpack.c.0.s8 %v180_v28  ;;  %s1602_s30 = sshll.u32 %s1801_s29, 4  ;;  %s3703_s30 = int_to_ptr.vmem [resolvable:$true] %s1602_s30 }
  0x5c   :  { %v95_v11 = vrot.slane %v90_v3, %v1904_v5  ;;  %v99_v12 = vrot.slane %v90_v3, %v1906_v6  ;;  %v103_v13 = vrot.slane %v90_v3, %v1908_v7  ;;  %v107_v14 = vrot.slane %v90_v3, %v106_v8  ;;  %s1737_s7 = scalar_lea.vmem %s3703_s30, 16  ;;  %s1741_s8 = scalar_lea.vmem %s3703_s30, 32 }
  0x5d   :  { %v111_v15 = vrot.slane %v90_v3, %v110_v9  ;;  %v115_v20 = vrot.slane %v90_v3, %v114_v10  ;;  %v184_v36 = vsub.s32 %v181_v30, %v93_v4  ;;  %v1619_v3 = vld.sshfl [vmem:[#allocation10 + $0x40] sm:$0x11 pattern:$0x75316420]  ;;  %p1738_p7 = scmp.ne.s32.totalorder %s3703_s30, %s1737_s7  ;;  %p1742_p8 = scmp.lt.s32.totalorder %s3703_s30, %s3703_s30 }
  0x5e   :  { %v123_v16 = vsel %vm122_vm0, %v95_v11, 0.0  ;;  %v124_v17 = vsel %vm122_vm0, %v99_v12, 0.0  ;;  %v126_v18 = vsel %vm122_vm0, %v103_v13, 0.0  ;;  %v128_v21 = vsel %vm122_vm0, %v107_v14, 0.0  ;;  %p1743_p9 = scmp.lt.s32.totalorder %s1741_s8, %s1737_s7 }
  0x5f   :  { %v125_v19 = vadd.f32 %v124_v17, %v123_v16  ;;  %v130_v23 = vsel %vm122_vm0, %v111_v15, 0.0  ;;  %v132_v25 = vsel %vm122_vm0, %v115_v20, 0.0  ;;  %v185_v40 = vrot.slane %v1630_v33, %v184_v36 }
  0x60   :  { %v192_v41 = vrot.slane %v1632_v34, %v184_v36  ;;  %v199_v42 = vrot.slane %v142_v31, %v184_v36  ;;  %v206_v43 = vrot.slane %v178_v35, %v184_v36  ;;  %v252_v44 = vrot.slane %v1634_v37, %v184_v36  ;;  %p1744_p10 = por %p1743_p9, %p1742_p8 }
  0x61   :  { %v127_v22 = vadd.f32 %v126_v18, %v125_v19  ;;  %v259_v45 = vrot.slane %v1636_v39, %v184_v36  ;;  %v266_v46 = vrot.slane %v145_v32, %v184_v36  ;;  %v273_v47 = vrot.slane %v245_v38, %v184_v36 }
  0x62   :  { %v207_v48 = vcombine.low %v185_v40, %v199_v42  ;;  %v208_v49 = vcombine.high %v185_v40, %v199_v42  ;;  %v209_v50 = vcombine.low %v192_v41, %v206_v43  ;;  %v210_v51 = vcombine.high %v192_v41, %v206_v43  ;;  %p1745_p11 = pnand %p1744_p10, %p1738_p7 }
  0x63   :  { %v129_v24 = vadd.f32 %v128_v21, %v127_v22  ;;  %v274_v52 = vcombine.low %v252_v44, %v266_v46  ;;  %v275_v53 = vcombine.high %v252_v44, %v266_v46  ;;  %v276_v54 = vcombine.low %v259_v45, %v273_v47 }
  0x64   :  { %v277_v55 = vcombine.high %v259_v45, %v273_v47  ;;  %v217_v56 = vrot.slane %v207_v48, %v184_v36  ;;  %v224_v57 = vrot.slane %v209_v50, %v184_v36  ;;  %v231_v58 = vrot.slane %v208_v49, %v184_v36 }
  0x65   :  { %v131_v26 = vadd.f32 %v130_v23, %v129_v24  ;;  %v238_v59 = vrot.slane %v210_v51, %v184_v36  ;;  %v284_v61 = vrot.slane %v274_v52, %v184_v36  ;;  %v291_v62 = vrot.slane %v276_v54, %v184_v36 }
  0x66   :  { %v239_v63 = vcombine.high %v217_v56, %v217_v56  ;;  %v240_v0 = vcombine.high %v224_v57, %v224_v57  ;;  %v298_v1 = vrot.slane %v275_v53, %v184_v36  ;;  %v305_v2 = vrot.slane %v277_v55, %v184_v36  ;;  %v2026_v55 = vld [vmem:[#allocation9] sm:$0xff] }
  0x67   :  { %v133_v29 = vadd.f32 %v132_v25, %v131_v26  ;;  %v241_v4 = vcombine.high %v231_v58, %v231_v58  ;;  %v242_v8 = vcombine.high %v238_v59, %v238_v59  ;;  %v306_v9 = vcombine.high %v284_v61, %v284_v61 }
  0x68   :  { %v307_v10 = vcombine.high %v291_v62, %v291_v62  ;;  %v317_v11 = vrot.slane %v1638_v60, %v184_v36  ;;  %v1914_v12 = vrot.slane %v217_v56, %v1904_v5  ;;  %v1917_v13 = vrot.slane %v217_v56, %v1906_v6 }
  0x69   :  { %134 = vadd.xlane.f32.xlu0 %v133_v29  ;;  %v1920_v14 = vrot.slane %v217_v56, %v1908_v7  ;;  %v1923_v15 = vrot.slane %v231_v58, %v1904_v5  ;;  %v1926_v16 = vrot.slane %v231_v58, %v1906_v6  ;;  %v1929_v17 = vrot.slane %v231_v58, %v1908_v7  ;;  %v2028_v56 = vld [vmem:[#allocation9 + $0x8] sm:$0xff] }
  0x6a   :  { %v1932_v18 = vrot.slane %v239_v63, %v1904_v5  ;;  %v325_v19 = vcombine.low %v317_v11, %v1619_v3  ;;  %v326_v20 = vcombine.high %v317_v11, %v1619_v3  ;;  %v1935_v21 = vrot.slane %v239_v63, %v1906_v6  ;;  %v2064_v11 = vld [vmem:[#allocation9 + $0x38] sm:$0xff] }
  0x6b   :  { %v1938_v22 = vrot.slane %v239_v63, %v1908_v7  ;;  %v308_v23 = vcombine.high %v298_v1, %v298_v1  ;;  %v1941_v24 = vrot.slane %v241_v4, %v1904_v5  ;;  %v1944_v25 = vrot.slane %v241_v4, %v1906_v6  ;;  %v2044_v63 = vld [vmem:[#allocation9 + $0x18] sm:$0xff] }
  0x6c   :  { %v1947_v26 = vrot.slane %v241_v4, %v1908_v7  ;;  %v309_v27 = vcombine.high %v305_v2, %v305_v2  ;;  %v333_v28 = vrot.slane %v325_v19, %v184_v36  ;;  %v340_v29 = vrot.slane %v326_v20, %v184_v36 }
  0x6d   :  { %v1950_v30 = vrot.slane %v224_v57, %v1904_v5  ;;  %v1953_v31 = vrot.slane %v224_v57, %v1906_v6  ;;  %v1956_v32 = vrot.slane %v224_v57, %v1908_v7  ;;  %v1959_v33 = vrot.slane %v238_v59, %v1904_v5 }
  0x6e   :  { %v1962_v34 = vrot.slane %v238_v59, %v1906_v6  ;;  %v1965_v35 = vrot.slane %v238_v59, %v1908_v7  ;;  %v1968_v36 = vrot.slane %v240_v0, %v1904_v5  ;;  %v1971_v37 = vrot.slane %v240_v0, %v1906_v6 }
  0x6f   :  { %v1974_v38 = vrot.slane %v240_v0, %v1908_v7  ;;  %v1979_v39 = vrot.slane %v242_v8, %v1904_v5  ;;  %v1982_v40 = vrot.slane %v242_v8, %v1906_v6  ;;  %v1985_v41 = vrot.slane %v242_v8, %v1908_v7  ;;  %v2046_v0 = vld [vmem:[#allocation9 + $0x20] sm:$0xff]  ;;  %v2060_v8 = vld [vmem:[#allocation9 + $0x28] sm:$0xff] }
  0x70   :  { %v1988_v42 = vrot.slane %v284_v61, %v1904_v5  ;;  %v1991_v43 = vrot.slane %v284_v61, %v1906_v6  ;;  %v1994_v44 = vrot.slane %v284_v61, %v1908_v7  ;;  %v1997_v45 = vrot.slane %v298_v1, %v1904_v5  ;;  %v2042_v61 = vld [vmem:[#allocation9 + $0x10] sm:$0xff] }
  0x71   :  { %v2000_v46 = vrot.slane %v298_v1, %v1906_v6  ;;  %v2003_v47 = vrot.slane %v298_v1, %v1908_v7  ;;  %v2006_v48 = vrot.slane %v306_v9, %v1904_v5  ;;  %v2009_v49 = vrot.slane %v306_v9, %v1906_v6 }
  0x72   :  { %v2012_v50 = vrot.slane %v306_v9, %v1908_v7  ;;  %v2015_v51 = vrot.slane %v308_v23, %v1904_v5  ;;  %v2018_v52 = vrot.slane %v308_v23, %v1906_v6  ;;  %v2021_v53 = vrot.slane %v308_v23, %v1908_v7  ;;  %v2062_v9 = vld [vmem:[#allocation9 + $0x30] sm:$0xff] }
  0x73   :  { %v2024_v54 = vrot.slane %v291_v62, %v1904_v5  ;;  %v2031_v57 = vrot.slane %v291_v62, %v1906_v6  ;;  %v2034_v58 = vrot.slane %v291_v62, %v1908_v7  ;;  %v2037_v59 = vrot.slane %v305_v2, %v1904_v5 }
  0x74   :  { %v2040_v60 = vrot.slane %v305_v2, %v1906_v6  ;;  %v2049_v1 = vrot.slane %v305_v2, %v1908_v7  ;;  %v2052_v3 = vrot.slane %v307_v10, %v1904_v5  ;;  %v2055_v62 = vrot.slane %v307_v10, %v1906_v6 }
  0x75   :  { %4122 = vst [vmem:[#allocation21_spill] sm:$0xff] %v2037_v59  ;;  %v2058_v4 = vrot.slane %v307_v10, %v1908_v7  ;;  %v2067_v19 = vrot.slane %v309_v27, %v1904_v5  ;;  %v2070_v2 = vrot.slane %v309_v27, %v1906_v6  ;;  %v2073_v20 = vrot.slane %v309_v27, %v1908_v7  ;;  %v2078_v10 = vld [vmem:[#allocation9 + $0x40] sm:$0xff] }
  0x76   :  { %4123 = vst [vmem:[#allocation22_spill] sm:$0xff] %v2040_v60  ;;  %4124 = vst [vmem:[#allocation23_spill] sm:$0xff] %v2049_v1  ;;  %v2076_v23 = vrot.slane %v333_v28, %v1904_v5  ;;  %v2094_v27 = vrot.slane %v340_v29, %v1906_v6  ;;  %v2099_v1 = vld [vmem:[#allocation9 + $0x60] sm:$0xff]  ;;  %v2101_v60 = vld [vmem:[#allocation9 + $0x68] sm:$0xff]  ;;  %v2104_v59 = vrot.slane %v340_v29, %v1908_v7 }
  0x77   :  { %4125 = vst [vmem:[#allocation24_spill] sm:$0xff] %v2052_v3  ;;  %4126 = vst [vmem:[#allocation25_spill] sm:$0xff] %v2055_v62  ;;  %v2082_v62 = vld [vmem:[#allocation9 + $0x50] sm:$0xff]  ;;  %v2085_v3 = vrot.slane %v333_v28, %v1906_v6  ;;  %v2114_v6 = vld [vmem:[#allocation9 + $0x80] sm:$0xff] }
  0x78   :  { %4127 = vst [vmem:[#allocation26_spill] sm:$0xff] %v2058_v4  ;;  %4128 = vst [vmem:[#allocation27_spill] sm:$0xff] %v2067_v19  ;;  %v2080_v4 = vld [vmem:[#allocation9 + $0x48] sm:$0xff]  ;;  %v2088_v19 = vrot.slane %v333_v28, %v1908_v7  ;;  %v2108_v28 = vmul.f32 %v1914_v12, %v2026_v55  ;;  %v2126_v7 = vmul.f32 %v1914_v12, %v2044_v63 }
  0x79   :  { %4129 = vst [vmem:[#allocation28_spill] sm:$0xff] %v2070_v2  ;;  %4130 = vst [vmem:[#allocation29_spill] sm:$0xff] %v2073_v20  ;;  %v2091_v2 = vrot.slane %v340_v29, %v1904_v5  ;;  %v2112_v5 = vld [vmem:[#allocation9 + $0x78] sm:$0xff]  ;;  %v2118_v20 = vmul.f32 %v1917_v13, %v2028_v56  ;;  %v2130_v29 = vmul.f32 %v1917_v13, %v2046_v0 }
  0x7a   :  { %4131 = vst [vmem:[#allocation30_spill] sm:$0xff] %v2076_v23  ;;  %4132 = vst [vmem:[#allocation31_spill] sm:$0xff] %v2088_v19  ;;  %v2097_v23 = vld [vmem:[#allocation9 + $0x58] sm:$0xff]  ;;  %v2110_v19 = vld [vmem:[#allocation9 + $0x70] sm:$0xff] }
  0x7b   :  { %4133 = vst [vmem:[#allocation32_spill] sm:$0xff] %v2091_v2  ;;  %4134 = vst [vmem:[#allocation33_spill] sm:$0xff] %v2094_v27  ;;  %v2122_v27 = vmul.f32 %v1920_v14, %v2042_v61  ;;  %v2156_v2 = vmul.f32 %v1917_v13, %v2082_v62 }
  0x7c   :  { %4135 = vst [vmem:[#allocation34_spill] sm:$0xff] %v2104_v59  ;;  %4136 = vst [vmem:[#allocation35_spill] sm:$0xff] %v2108_v28  ;;  %v2132_v28 = vld [vmem:[#allocation9 + $0x88] sm:$0xff]  ;;  %v2136_v59 = vmul.f32 %v1920_v14, %v2060_v8 }
  0x7d   :  { %4137 = vst [vmem:[#allocation36_spill] sm:$0xff] %v2118_v20  ;;  %4138 = vst [vmem:[#allocation37_spill] sm:$0xff] %v2122_v27  ;;  %v2140_v20 = vmul.f32 %v1914_v12, %v2062_v9  ;;  %v2144_v27 = vmul.f32 %v1917_v13, %v2064_v11 }
  0x7e   :  { %4139 = vst [vmem:[#allocation38_spill] sm:$0xff] %v2126_v7  ;;  %4140 = vst [vmem:[#allocation39_spill] sm:$0xff] %v2130_v29  ;;  %v2148_v7 = vmul.f32 %v1920_v14, %v2078_v10  ;;  %v2152_v29 = vmul.f32 %v1914_v12, %v2080_v4 }
  0x7f   :  { %4141 = vst [vmem:[#allocation40_spill] sm:$0xff] %v2136_v59  ;;  %4142 = vst [vmem:[#allocation41_spill] sm:$0xff] %v2140_v20  ;;  %v2160_v59 = vmul.f32 %v1920_v14, %v2097_v23  ;;  %v2164_v20 = vmul.f32 %v1914_v12, %v2099_v1 }
  0x80   :  { %4143 = vst [vmem:[#allocation42_spill] sm:$0xff] %v2144_v27  ;;  %4144 = vst [vmem:[#allocation43_spill] sm:$0xff] %v2148_v7  ;;  %v2168_v27 = vmul.f32 %v1917_v13, %v2101_v60  ;;  %v2172_v7 = vmul.f32 %v1920_v14, %v2110_v19 }
  0x81   :  { %4145 = vst [vmem:[#allocation44_spill] sm:$0xff] %v2152_v29  ;;  %4146 = vst [vmem:[#allocation45_spill] sm:$0xff] %v2156_v2  ;;  %v2176_v29 = vmul.f32 %v1914_v12, %v2112_v5  ;;  %v2180_v2 = vmul.f32 %v1917_v13, %v2114_v6  ;;  %v2196_v12 = vmul.f32 %v1929_v17, %v2042_v61 }
  0x82   :  { %4147 = vst [vmem:[#allocation46_spill] sm:$0xff] %v2160_v59  ;;  %4148 = vst [vmem:[#allocation47_spill] sm:$0xff] %v2164_v20  ;;  %v2184_v59 = vmul.f32 %v1920_v14, %v2132_v28  ;;  %v2188_v20 = vmul.f32 %v1923_v15, %v2026_v55  ;;  %v2200_v13 = vmul.f32 %v1923_v15, %v2044_v63 }
  0x83   :  { %4149 = vst [vmem:[#allocation48_spill] sm:$0xff] %v2168_v27  ;;  %v2192_v27 = vmul.f32 %v1926_v16, %v2028_v56  ;;  %4153 = vst [vmem:[#allocation52_spill] sm:$0xff] %v2196_v12  ;;  %v2204_v14 = vmul.f32 %v1926_v16, %v2046_v0  ;;  %v2220_v12 = vmul.f32 %v1929_v17, %v2078_v10 }
  0x84   :  { %4150 = vst [vmem:[#allocation49_spill] sm:$0xff] %v2184_v59  ;;  %4151 = vst [vmem:[#allocation50_spill] sm:$0xff] %v2188_v20  ;;  %v2208_v59 = vmul.f32 %v1929_v17, %v2060_v8  ;;  %v2212_v20 = vmul.f32 %v1923_v15, %v2062_v9 }
  0x85   :  { %4152 = vst [vmem:[#allocation51_spill] sm:$0xff] %v2192_v27  ;;  %4154 = vst [vmem:[#allocation53_spill] sm:$0xff] %v2200_v13  ;;  %v2216_v27 = vmul.f32 %v1926_v16, %v2064_v11  ;;  %v2224_v13 = vmul.f32 %v1923_v15, %v2080_v4 }
  0x86   :  { %4155 = vst [vmem:[#allocation54_spill] sm:$0xff] %v2204_v14  ;;  %4156 = vst [vmem:[#allocation55_spill] sm:$0xff] %v2208_v59  ;;  %v2228_v14 = vmul.f32 %v1926_v16, %v2082_v62  ;;  %v2232_v59 = vmul.f32 %v1929_v17, %v2097_v23 }
  0x87   :  { %4157 = vst [vmem:[#allocation56_spill] sm:$0xff] %v2212_v20  ;;  %4158 = vst [vmem:[#allocation57_spill] sm:$0xff] %v2216_v27  ;;  %v2236_v20 = vmul.f32 %v1923_v15, %v2099_v1  ;;  %v2240_v27 = vmul.f32 %v1926_v16, %v2101_v60 }
  0x88   :  { %4159 = vst [vmem:[#allocation58_spill] sm:$0xff] %v2220_v12  ;;  %4160 = vst [vmem:[#allocation59_spill] sm:$0xff] %v2224_v13  ;;  %v2244_v12 = vmul.f32 %v1929_v17, %v2110_v19  ;;  %v2248_v13 = vmul.f32 %v1923_v15, %v2112_v5  ;;  %v2268_v15 = vmul.f32 %v1938_v22, %v2042_v61 }
  0x89   :  { %4161 = vst [vmem:[#allocation60_spill] sm:$0xff] %v2228_v14  ;;  %4162 = vst [vmem:[#allocation61_spill] sm:$0xff] %v2232_v59  ;;  %v2252_v14 = vmul.f32 %v1926_v16, %v2114_v6  ;;  %v2256_v59 = vmul.f32 %v1929_v17, %v2132_v28  ;;  %v2272_v16 = vmul.f32 %v1932_v18, %v2044_v63 }
  0x8a   :  { %4163 = vst [vmem:[#allocation62_spill] sm:$0xff] %v2236_v20  ;;  %4164 = vst [vmem:[#allocation63_spill] sm:$0xff] %v2240_v27  ;;  %v2260_v20 = vmul.f32 %v1932_v18, %v2026_v55  ;;  %v2264_v27 = vmul.f32 %v1935_v21, %v2028_v56  ;;  %v2276_v17 = vmul.f32 %v1935_v21, %v2046_v0 }
  0x8b   :  { %4165 = vst [vmem:[#allocation64_spill] sm:$0xff] %v2256_v59  ;;  %4168 = vst [vmem:[#allocation67_spill] sm:$0xff] %v2268_v15  ;;  %v2280_v59 = vmul.f32 %v1938_v22, %v2060_v8  ;;  %v2292_v15 = vmul.f32 %v1938_v22, %v2078_v10 }
  0x8c   :  { %4166 = vst [vmem:[#allocation65_spill] sm:$0xff] %v2260_v20  ;;  %4167 = vst [vmem:[#allocation66_spill] sm:$0xff] %v2264_v27  ;;  %v2284_v20 = vmul.f32 %v1932_v18, %v2062_v9  ;;  %v2288_v27 = vmul.f32 %v1935_v21, %v2064_v11 }
  0x8d   :  { %4169 = vst [vmem:[#allocation68_spill] sm:$0xff] %v2272_v16  ;;  %4170 = vst [vmem:[#allocation69_spill] sm:$0xff] %v2276_v17  ;;  %v2296_v16 = vmul.f32 %v1932_v18, %v2080_v4  ;;  %v2300_v17 = vmul.f32 %v1935_v21, %v2082_v62 }
  0x8e   :  { %4171 = vst [vmem:[#allocation70_spill] sm:$0xff] %v2280_v59  ;;  %4172 = vst [vmem:[#allocation71_spill] sm:$0xff] %v2284_v20  ;;  %v2304_v59 = vmul.f32 %v1938_v22, %v2097_v23  ;;  %v2308_v20 = vmul.f32 %v1932_v18, %v2099_v1 }
  0x8f   :  { %4173 = vst [vmem:[#allocation72_spill] sm:$0xff] %v2288_v27  ;;  %4174 = vst [vmem:[#allocation73_spill] sm:$0xff] %v2292_v15  ;;  %v2312_v27 = vmul.f32 %v1935_v21, %v2101_v60  ;;  %v2316_v15 = vmul.f32 %v1938_v22, %v2110_v19 }
  0x90   :  { %4175 = vst [vmem:[#allocation74_spill] sm:$0xff] %v2296_v16  ;;  %4176 = vst [vmem:[#allocation75_spill] sm:$0xff] %v2300_v17  ;;  %v2320_v16 = vmul.f32 %v1932_v18, %v2112_v5  ;;  %v2324_v17 = vmul.f32 %v1935_v21, %v2114_v6  ;;  %v2340_v18 = vmul.f32 %v1947_v26, %v2042_v61 }
  0x91   :  { %4177 = vst [vmem:[#allocation76_spill] sm:$0xff] %v2304_v59  ;;  %4178 = vst [vmem:[#allocation77_spill] sm:$0xff] %v2308_v20  ;;  %v2328_v59 = vmul.f32 %v1938_v22, %v2132_v28  ;;  %v2332_v20 = vmul.f32 %v1941_v24, %v2026_v55  ;;  %v2344_v21 = vmul.f32 %v1941_v24, %v2044_v63 }
  0x92   :  { %4179 = vst [vmem:[#allocation78_spill] sm:$0xff] %v2312_v27  ;;  %v2336_v27 = vmul.f32 %v1944_v25, %v2028_v56  ;;  %4183 = vst [vmem:[#allocation82_spill] sm:$0xff] %v2340_v18  ;;  %v2348_v22 = vmul.f32 %v1944_v25, %v2046_v0  ;;  %v2364_v18 = vmul.f32 %v1947_v26, %v2078_v10 }
  0x93   :  { %4180 = vst [vmem:[#allocation79_spill] sm:$0xff] %v2328_v59  ;;  %4181 = vst [vmem:[#allocation80_spill] sm:$0xff] %v2332_v20  ;;  %v2352_v59 = vmul.f32 %v1947_v26, %v2060_v8  ;;  %v2356_v20 = vmul.f32 %v1941_v24, %v2062_v9 }
  0x94   :  { %4182 = vst [vmem:[#allocation81_spill] sm:$0xff] %v2336_v27  ;;  %4184 = vst [vmem:[#allocation83_spill] sm:$0xff] %v2344_v21  ;;  %v2360_v27 = vmul.f32 %v1944_v25, %v2064_v11  ;;  %v2368_v21 = vmul.f32 %v1941_v24, %v2080_v4 }
  0x95   :  { %4185 = vst [vmem:[#allocation84_spill] sm:$0xff] %v2348_v22  ;;  %4186 = vst [vmem:[#allocation85_spill] sm:$0xff] %v2352_v59  ;;  %v2372_v22 = vmul.f32 %v1944_v25, %v2082_v62  ;;  %v2376_v59 = vmul.f32 %v1947_v26, %v2097_v23 }
  0x96   :  { %4187 = vst [vmem:[#allocation86_spill] sm:$0xff] %v2356_v20  ;;  %4188 = vst [vmem:[#allocation87_spill] sm:$0xff] %v2360_v27  ;;  %v2380_v20 = vmul.f32 %v1941_v24, %v2099_v1  ;;  %v2384_v27 = vmul.f32 %v1944_v25, %v2101_v60 }
  0x97   :  { %4189 = vst [vmem:[#allocation88_spill] sm:$0xff] %v2364_v18  ;;  %4190 = vst [vmem:[#allocation89_spill] sm:$0xff] %v2368_v21  ;;  %v2388_v18 = vmul.f32 %v1947_v26, %v2110_v19  ;;  %v2392_v21 = vmul.f32 %v1941_v24, %v2112_v5  ;;  %v2412_v24 = vmul.f32 %v1956_v32, %v2042_v61 }
  0x98   :  { %4191 = vst [vmem:[#allocation90_spill] sm:$0xff] %v2372_v22  ;;  %4192 = vst [vmem:[#allocation91_spill] sm:$0xff] %v2376_v59  ;;  %v2396_v22 = vmul.f32 %v1944_v25, %v2114_v6  ;;  %v2400_v59 = vmul.f32 %v1947_v26, %v2132_v28  ;;  %v2416_v25 = vmul.f32 %v1950_v30, %v2044_v63 }
  0x99   :  { %4193 = vst [vmem:[#allocation92_spill] sm:$0xff] %v2380_v20  ;;  %4194 = vst [vmem:[#allocation93_spill] sm:$0xff] %v2384_v27  ;;  %v2404_v20 = vmul.f32 %v1950_v30, %v2026_v55  ;;  %v2408_v27 = vmul.f32 %v1953_v31, %v2028_v56  ;;  %v2420_v26 = vmul.f32 %v1953_v31, %v2046_v0 }
  0x9a   :  { %4195 = vst [vmem:[#allocation94_spill] sm:$0xff] %v2400_v59  ;;  %4198 = vst [vmem:[#allocation97_spill] sm:$0xff] %v2412_v24  ;;  %v2424_v59 = vmul.f32 %v1956_v32, %v2060_v8  ;;  %v2436_v24 = vmul.f32 %v1956_v32, %v2078_v10 }
  0x9b   :  { %4196 = vst [vmem:[#allocation95_spill] sm:$0xff] %v2404_v20  ;;  %4197 = vst [vmem:[#allocation96_spill] sm:$0xff] %v2408_v27  ;;  %v2428_v20 = vmul.f32 %v1950_v30, %v2062_v9  ;;  %v2432_v27 = vmul.f32 %v1953_v31, %v2064_v11 }
  0x9c   :  { %4199 = vst [vmem:[#allocation98_spill] sm:$0xff] %v2416_v25  ;;  %4200 = vst [vmem:[#allocation99_spill] sm:$0xff] %v2420_v26  ;;  %v2440_v25 = vmul.f32 %v1950_v30, %v2080_v4  ;;  %v2444_v26 = vmul.f32 %v1953_v31, %v2082_v62 }
  0x9d   :  { %4201 = vst [vmem:[#allocation100_spill] sm:$0xff] %v2424_v59  ;;  %4202 = vst [vmem:[#allocation101_spill] sm:$0xff] %v2428_v20  ;;  %v2448_v59 = vmul.f32 %v1956_v32, %v2097_v23  ;;  %v2452_v20 = vmul.f32 %v1950_v30, %v2099_v1 }
  0x9e   :  { %4203 = vst [vmem:[#allocation102_spill] sm:$0xff] %v2432_v27  ;;  %4204 = vst [vmem:[#allocation103_spill] sm:$0xff] %v2436_v24  ;;  %v2456_v27 = vmul.f32 %v1953_v31, %v2101_v60  ;;  %v2460_v24 = vmul.f32 %v1956_v32, %v2110_v19 }
  0x9f   :  { %4205 = vst [vmem:[#allocation104_spill] sm:$0xff] %v2440_v25  ;;  %4206 = vst [vmem:[#allocation105_spill] sm:$0xff] %v2444_v26  ;;  %v2464_v25 = vmul.f32 %v1950_v30, %v2112_v5  ;;  %v2468_v26 = vmul.f32 %v1953_v31, %v2114_v6  ;;  %v2484_v30 = vmul.f32 %v1965_v35, %v2042_v61 }
  0xa0   :  { %4207 = vst [vmem:[#allocation106_spill] sm:$0xff] %v2448_v59  ;;  %4208 = vst [vmem:[#allocation107_spill] sm:$0xff] %v2452_v20  ;;  %v2472_v59 = vmul.f32 %v1956_v32, %v2132_v28  ;;  %v2476_v20 = vmul.f32 %v1959_v33, %v2026_v55  ;;  %v2488_v31 = vmul.f32 %v1959_v33, %v2044_v63 }
  0xa1   :  { %4209 = vst [vmem:[#allocation108_spill] sm:$0xff] %v2456_v27  ;;  %v2480_v27 = vmul.f32 %v1962_v34, %v2028_v56  ;;  %4213 = vst [vmem:[#allocation112_spill] sm:$0xff] %v2484_v30  ;;  %v2492_v32 = vmul.f32 %v1962_v34, %v2046_v0  ;;  %v2508_v30 = vmul.f32 %v1965_v35, %v2078_v10 }
  0xa2   :  { %4210 = vst [vmem:[#allocation109_spill] sm:$0xff] %v2472_v59  ;;  %4211 = vst [vmem:[#allocation110_spill] sm:$0xff] %v2476_v20  ;;  %v2496_v59 = vmul.f32 %v1965_v35, %v2060_v8  ;;  %v2500_v20 = vmul.f32 %v1959_v33, %v2062_v9 }
  0xa3   :  { %4212 = vst [vmem:[#allocation111_spill] sm:$0xff] %v2480_v27  ;;  %4214 = vst [vmem:[#allocation113_spill] sm:$0xff] %v2488_v31  ;;  %v2504_v27 = vmul.f32 %v1962_v34, %v2064_v11  ;;  %v2512_v31 = vmul.f32 %v1959_v33, %v2080_v4 }
  0xa4   :  { %4215 = vst [vmem:[#allocation114_spill] sm:$0xff] %v2492_v32  ;;  %4216 = vst [vmem:[#allocation115_spill] sm:$0xff] %v2496_v59  ;;  %v2516_v32 = vmul.f32 %v1962_v34, %v2082_v62  ;;  %v2520_v59 = vmul.f32 %v1965_v35, %v2097_v23 }
  0xa5   :  { %4217 = vst [vmem:[#allocation116_spill] sm:$0xff] %v2500_v20  ;;  %4218 = vst [vmem:[#allocation117_spill] sm:$0xff] %v2504_v27  ;;  %v2524_v20 = vmul.f32 %v1959_v33, %v2099_v1  ;;  %v2528_v27 = vmul.f32 %v1962_v34, %v2101_v60 }
  0xa6   :  { %4219 = vst [vmem:[#allocation118_spill] sm:$0xff] %v2508_v30  ;;  %4220 = vst [vmem:[#allocation119_spill] sm:$0xff] %v2512_v31  ;;  %v2532_v30 = vmul.f32 %v1965_v35, %v2110_v19  ;;  %v2536_v31 = vmul.f32 %v1959_v33, %v2112_v5  ;;  %v2556_v33 = vmul.f32 %v1974_v38, %v2042_v61 }
  0xa7   :  { %4221 = vst [vmem:[#allocation120_spill] sm:$0xff] %v2516_v32  ;;  %4222 = vst [vmem:[#allocation121_spill] sm:$0xff] %v2520_v59  ;;  %v2540_v32 = vmul.f32 %v1962_v34, %v2114_v6  ;;  %v2544_v59 = vmul.f32 %v1965_v35, %v2132_v28  ;;  %v2560_v34 = vmul.f32 %v1968_v36, %v2044_v63 }
  0xa8   :  { %4223 = vst [vmem:[#allocation122_spill] sm:$0xff] %v2524_v20  ;;  %4224 = vst [vmem:[#allocation123_spill] sm:$0xff] %v2528_v27  ;;  %v2548_v20 = vmul.f32 %v1968_v36, %v2026_v55  ;;  %v2552_v27 = vmul.f32 %v1971_v37, %v2028_v56  ;;  %v2564_v35 = vmul.f32 %v1971_v37, %v2046_v0 }
  0xa9   :  { %4225 = vst [vmem:[#allocation124_spill] sm:$0xff] %v2544_v59  ;;  %4228 = vst [vmem:[#allocation127_spill] sm:$0xff] %v2556_v33  ;;  %v2568_v59 = vmul.f32 %v1974_v38, %v2060_v8  ;;  %v2580_v33 = vmul.f32 %v1974_v38, %v2078_v10 }
  0xaa   :  { %4226 = vst [vmem:[#allocation125_spill] sm:$0xff] %v2548_v20  ;;  %4227 = vst [vmem:[#allocation126_spill] sm:$0xff] %v2552_v27  ;;  %v2572_v20 = vmul.f32 %v1968_v36, %v2062_v9  ;;  %v2576_v27 = vmul.f32 %v1971_v37, %v2064_v11 }
  0xab   :  { %4229 = vst [vmem:[#allocation128_spill] sm:$0xff] %v2560_v34  ;;  %4230 = vst [vmem:[#allocation129_spill] sm:$0xff] %v2564_v35  ;;  %v2584_v34 = vmul.f32 %v1968_v36, %v2080_v4  ;;  %v2588_v35 = vmul.f32 %v1971_v37, %v2082_v62 }
  0xac   :  { %4231 = vst [vmem:[#allocation130_spill] sm:$0xff] %v2568_v59  ;;  %4232 = vst [vmem:[#allocation131_spill] sm:$0xff] %v2572_v20  ;;  %v2592_v59 = vmul.f32 %v1974_v38, %v2097_v23  ;;  %v2596_v20 = vmul.f32 %v1968_v36, %v2099_v1 }
  0xad   :  { %4233 = vst [vmem:[#allocation132_spill] sm:$0xff] %v2576_v27  ;;  %4234 = vst [vmem:[#allocation133_spill] sm:$0xff] %v2580_v33  ;;  %v2600_v27 = vmul.f32 %v1971_v37, %v2101_v60  ;;  %v2604_v33 = vmul.f32 %v1974_v38, %v2110_v19 }
  0xae   :  { %4235 = vst [vmem:[#allocation134_spill] sm:$0xff] %v2584_v34  ;;  %4236 = vst [vmem:[#allocation135_spill] sm:$0xff] %v2588_v35  ;;  %v2608_v34 = vmul.f32 %v1968_v36, %v2112_v5  ;;  %v2612_v35 = vmul.f32 %v1971_v37, %v2114_v6  ;;  %v2628_v36 = vmul.f32 %v1985_v41, %v2042_v61 }
  0xaf   :  { %4237 = vst [vmem:[#allocation136_spill] sm:$0xff] %v2592_v59  ;;  %4238 = vst [vmem:[#allocation137_spill] sm:$0xff] %v2596_v20  ;;  %v2616_v59 = vmul.f32 %v1974_v38, %v2132_v28  ;;  %v2620_v20 = vmul.f32 %v1979_v39, %v2026_v55  ;;  %v2632_v37 = vmul.f32 %v1979_v39, %v2044_v63 }
  0xb0   :  { %4239 = vst [vmem:[#allocation138_spill] sm:$0xff] %v2600_v27  ;;  %v2624_v27 = vmul.f32 %v1982_v40, %v2028_v56  ;;  %4243 = vst [vmem:[#allocation142_spill] sm:$0xff] %v2628_v36  ;;  %v2636_v38 = vmul.f32 %v1982_v40, %v2046_v0  ;;  %v2652_v36 = vmul.f32 %v1985_v41, %v2078_v10 }
  0xb1   :  { %4240 = vst [vmem:[#allocation139_spill] sm:$0xff] %v2616_v59  ;;  %4241 = vst [vmem:[#allocation140_spill] sm:$0xff] %v2620_v20  ;;  %v2640_v59 = vmul.f32 %v1985_v41, %v2060_v8  ;;  %v2644_v20 = vmul.f32 %v1979_v39, %v2062_v9 }
  0xb2   :  { %4242 = vst [vmem:[#allocation141_spill] sm:$0xff] %v2624_v27  ;;  %4244 = vst [vmem:[#allocation143_spill] sm:$0xff] %v2632_v37  ;;  %v2648_v27 = vmul.f32 %v1982_v40, %v2064_v11  ;;  %v2656_v37 = vmul.f32 %v1979_v39, %v2080_v4 }
  0xb3   :  { %4245 = vst [vmem:[#allocation144_spill] sm:$0xff] %v2636_v38  ;;  %4246 = vst [vmem:[#allocation145_spill] sm:$0xff] %v2640_v59  ;;  %v2660_v38 = vmul.f32 %v1982_v40, %v2082_v62  ;;  %v2664_v59 = vmul.f32 %v1985_v41, %v2097_v23 }
  0xb4   :  { %4247 = vst [vmem:[#allocation146_spill] sm:$0xff] %v2644_v20  ;;  %4248 = vst [vmem:[#allocation147_spill] sm:$0xff] %v2648_v27  ;;  %v2668_v20 = vmul.f32 %v1979_v39, %v2099_v1  ;;  %v2672_v27 = vmul.f32 %v1982_v40, %v2101_v60 }
  0xb5   :  { %4249 = vst [vmem:[#allocation148_spill] sm:$0xff] %v2652_v36  ;;  %4250 = vst [vmem:[#allocation149_spill] sm:$0xff] %v2656_v37  ;;  %v2676_v36 = vmul.f32 %v1985_v41, %v2110_v19  ;;  %v2680_v37 = vmul.f32 %v1979_v39, %v2112_v5  ;;  %v2700_v39 = vmul.f32 %v1994_v44, %v2042_v61 }
  0xb6   :  { %4251 = vst [vmem:[#allocation150_spill] sm:$0xff] %v2660_v38  ;;  %4252 = vst [vmem:[#allocation151_spill] sm:$0xff] %v2664_v59  ;;  %v2684_v38 = vmul.f32 %v1982_v40, %v2114_v6  ;;  %v2688_v59 = vmul.f32 %v1985_v41, %v2132_v28  ;;  %v2704_v40 = vmul.f32 %v1988_v42, %v2044_v63 }
  0xb7   :  { %4253 = vst [vmem:[#allocation152_spill] sm:$0xff] %v2668_v20  ;;  %4254 = vst [vmem:[#allocation153_spill] sm:$0xff] %v2672_v27  ;;  %v2692_v20 = vmul.f32 %v1988_v42, %v2026_v55  ;;  %v2696_v27 = vmul.f32 %v1991_v43, %v2028_v56  ;;  %v2708_v41 = vmul.f32 %v1991_v43, %v2046_v0 }
  0xb8   :  { %4255 = vst [vmem:[#allocation154_spill] sm:$0xff] %v2688_v59  ;;  %4258 = vst [vmem:[#allocation157_spill] sm:$0xff] %v2700_v39  ;;  %v2712_v59 = vmul.f32 %v1994_v44, %v2060_v8  ;;  %v2724_v39 = vmul.f32 %v1994_v44, %v2078_v10 }
  0xb9   :  { %4256 = vst [vmem:[#allocation155_spill] sm:$0xff] %v2692_v20  ;;  %4257 = vst [vmem:[#allocation156_spill] sm:$0xff] %v2696_v27  ;;  %v2716_v20 = vmul.f32 %v1988_v42, %v2062_v9  ;;  %v2720_v27 = vmul.f32 %v1991_v43, %v2064_v11 }
  0xba   :  { %4259 = vst [vmem:[#allocation158_spill] sm:$0xff] %v2704_v40  ;;  %4260 = vst [vmem:[#allocation159_spill] sm:$0xff] %v2708_v41  ;;  %v2728_v40 = vmul.f32 %v1988_v42, %v2080_v4  ;;  %v2732_v41 = vmul.f32 %v1991_v43, %v2082_v62 }
  0xbb   :  { %4261 = vst [vmem:[#allocation160_spill] sm:$0xff] %v2712_v59  ;;  %4262 = vst [vmem:[#allocation161_spill] sm:$0xff] %v2716_v20  ;;  %v2736_v59 = vmul.f32 %v1994_v44, %v2097_v23  ;;  %v2740_v20 = vmul.f32 %v1988_v42, %v2099_v1 }
  0xbc   :  { %4263 = vst [vmem:[#allocation162_spill] sm:$0xff] %v2720_v27  ;;  %4264 = vst [vmem:[#allocation163_spill] sm:$0xff] %v2724_v39  ;;  %v2744_v27 = vmul.f32 %v1991_v43, %v2101_v60  ;;  %v2748_v39 = vmul.f32 %v1994_v44, %v2110_v19 }
  0xbd   :  { %4265 = vst [vmem:[#allocation164_spill] sm:$0xff] %v2728_v40  ;;  %4266 = vst [vmem:[#allocation165_spill] sm:$0xff] %v2732_v41  ;;  %v2752_v40 = vmul.f32 %v1988_v42, %v2112_v5  ;;  %v2756_v41 = vmul.f32 %v1991_v43, %v2114_v6  ;;  %v2772_v42 = vmul.f32 %v2003_v47, %v2042_v61 }
  0xbe   :  { %4267 = vst [vmem:[#allocation166_spill] sm:$0xff] %v2736_v59  ;;  %4268 = vst [vmem:[#allocation167_spill] sm:$0xff] %v2740_v20  ;;  %v2760_v59 = vmul.f32 %v1994_v44, %v2132_v28  ;;  %v2764_v20 = vmul.f32 %v1997_v45, %v2026_v55  ;;  %v2776_v43 = vmul.f32 %v1997_v45, %v2044_v63 }
  0xbf   :  { %4269 = vst [vmem:[#allocation168_spill] sm:$0xff] %v2744_v27  ;;  %v2768_v27 = vmul.f32 %v2000_v46, %v2028_v56  ;;  %4273 = vst [vmem:[#allocation172_spill] sm:$0xff] %v2772_v42  ;;  %v2780_v44 = vmul.f32 %v2000_v46, %v2046_v0  ;;  %v2796_v42 = vmul.f32 %v2003_v47, %v2078_v10 }
  0xc0   :  { %4270 = vst [vmem:[#allocation169_spill] sm:$0xff] %v2760_v59  ;;  %4271 = vst [vmem:[#allocation170_spill] sm:$0xff] %v2764_v20  ;;  %v2784_v59 = vmul.f32 %v2003_v47, %v2060_v8  ;;  %v2788_v20 = vmul.f32 %v1997_v45, %v2062_v9 }
  0xc1   :  { %4272 = vst [vmem:[#allocation171_spill] sm:$0xff] %v2768_v27  ;;  %4274 = vst [vmem:[#allocation173_spill] sm:$0xff] %v2776_v43  ;;  %v2792_v27 = vmul.f32 %v2000_v46, %v2064_v11  ;;  %v2800_v43 = vmul.f32 %v1997_v45, %v2080_v4 }
  0xc2   :  { %4275 = vst [vmem:[#allocation174_spill] sm:$0xff] %v2780_v44  ;;  %4276 = vst [vmem:[#allocation175_spill] sm:$0xff] %v2784_v59  ;;  %v2804_v44 = vmul.f32 %v2000_v46, %v2082_v62  ;;  %v2808_v59 = vmul.f32 %v2003_v47, %v2097_v23 }
  0xc3   :  { %4277 = vst [vmem:[#allocation176_spill] sm:$0xff] %v2788_v20  ;;  %4278 = vst [vmem:[#allocation177_spill] sm:$0xff] %v2792_v27  ;;  %v2812_v20 = vmul.f32 %v1997_v45, %v2099_v1  ;;  %v2816_v27 = vmul.f32 %v2000_v46, %v2101_v60 }
  0xc4   :  { %4279 = vst [vmem:[#allocation178_spill] sm:$0xff] %v2796_v42  ;;  %4280 = vst [vmem:[#allocation179_spill] sm:$0xff] %v2800_v43  ;;  %v2820_v42 = vmul.f32 %v2003_v47, %v2110_v19  ;;  %v2824_v43 = vmul.f32 %v1997_v45, %v2112_v5  ;;  %v2844_v45 = vmul.f32 %v2012_v50, %v2042_v61 }
  0xc5   :  { %4281 = vst [vmem:[#allocation180_spill] sm:$0xff] %v2804_v44  ;;  %4282 = vst [vmem:[#allocation181_spill] sm:$0xff] %v2808_v59  ;;  %v2828_v44 = vmul.f32 %v2000_v46, %v2114_v6  ;;  %v2832_v59 = vmul.f32 %v2003_v47, %v2132_v28  ;;  %v2848_v46 = vmul.f32 %v2006_v48, %v2044_v63 }
  0xc6   :  { %4283 = vst [vmem:[#allocation182_spill] sm:$0xff] %v2812_v20  ;;  %4284 = vst [vmem:[#allocation183_spill] sm:$0xff] %v2816_v27  ;;  %v2836_v20 = vmul.f32 %v2006_v48, %v2026_v55  ;;  %v2840_v27 = vmul.f32 %v2009_v49, %v2028_v56  ;;  %v2852_v47 = vmul.f32 %v2009_v49, %v2046_v0 }
  0xc7   :  { %4285 = vst [vmem:[#allocation184_spill] sm:$0xff] %v2832_v59  ;;  %4288 = vst [vmem:[#allocation187_spill] sm:$0xff] %v2844_v45  ;;  %v2856_v59 = vmul.f32 %v2012_v50, %v2060_v8  ;;  %v2868_v45 = vmul.f32 %v2012_v50, %v2078_v10 }
  0xc8   :  { %4286 = vst [vmem:[#allocation185_spill] sm:$0xff] %v2836_v20  ;;  %4287 = vst [vmem:[#allocation186_spill] sm:$0xff] %v2840_v27  ;;  %v2860_v20 = vmul.f32 %v2006_v48, %v2062_v9  ;;  %v2864_v27 = vmul.f32 %v2009_v49, %v2064_v11 }
  0xc9   :  { %4289 = vst [vmem:[#allocation188_spill] sm:$0xff] %v2848_v46  ;;  %4290 = vst [vmem:[#allocation189_spill] sm:$0xff] %v2852_v47  ;;  %v2872_v46 = vmul.f32 %v2006_v48, %v2080_v4  ;;  %v2876_v47 = vmul.f32 %v2009_v49, %v2082_v62 }
  0xca   :  { %4291 = vst [vmem:[#allocation190_spill] sm:$0xff] %v2856_v59  ;;  %4292 = vst [vmem:[#allocation191_spill] sm:$0xff] %v2860_v20  ;;  %v2880_v59 = vmul.f32 %v2012_v50, %v2097_v23  ;;  %v2884_v20 = vmul.f32 %v2006_v48, %v2099_v1 }
  0xcb   :  { %4293 = vst [vmem:[#allocation192_spill] sm:$0xff] %v2864_v27  ;;  %4294 = vst [vmem:[#allocation193_spill] sm:$0xff] %v2868_v45  ;;  %v2888_v27 = vmul.f32 %v2009_v49, %v2101_v60  ;;  %v2892_v45 = vmul.f32 %v2012_v50, %v2110_v19 }
  0xcc   :  { %4295 = vst [vmem:[#allocation194_spill] sm:$0xff] %v2872_v46  ;;  %4296 = vst [vmem:[#allocation195_spill] sm:$0xff] %v2876_v47  ;;  %v2896_v46 = vmul.f32 %v2006_v48, %v2112_v5  ;;  %v2900_v47 = vmul.f32 %v2009_v49, %v2114_v6  ;;  %v2916_v48 = vmul.f32 %v2021_v53, %v2042_v61 }
  0xcd   :  { %4297 = vst [vmem:[#allocation196_spill] sm:$0xff] %v2880_v59  ;;  %4298 = vst [vmem:[#allocation197_spill] sm:$0xff] %v2884_v20  ;;  %v2904_v59 = vmul.f32 %v2012_v50, %v2132_v28  ;;  %v2908_v20 = vmul.f32 %v2015_v51, %v2026_v55  ;;  %v2920_v49 = vmul.f32 %v2015_v51, %v2044_v63 }
  0xce   :  { %4299 = vst [vmem:[#allocation198_spill] sm:$0xff] %v2888_v27  ;;  %v2912_v27 = vmul.f32 %v2018_v52, %v2028_v56  ;;  %4303 = vst [vmem:[#allocation202_spill] sm:$0xff] %v2916_v48  ;;  %v2924_v50 = vmul.f32 %v2018_v52, %v2046_v0  ;;  %v2940_v48 = vmul.f32 %v2021_v53, %v2078_v10 }
  0xcf   :  { %4300 = vst [vmem:[#allocation199_spill] sm:$0xff] %v2904_v59  ;;  %4301 = vst [vmem:[#allocation200_spill] sm:$0xff] %v2908_v20  ;;  %v2928_v59 = vmul.f32 %v2021_v53, %v2060_v8  ;;  %v2932_v20 = vmul.f32 %v2015_v51, %v2062_v9 }
  0xd0   :  { %4302 = vst [vmem:[#allocation201_spill] sm:$0xff] %v2912_v27  ;;  %4304 = vst [vmem:[#allocation203_spill] sm:$0xff] %v2920_v49  ;;  %v2936_v27 = vmul.f32 %v2018_v52, %v2064_v11  ;;  %v2944_v49 = vmul.f32 %v2015_v51, %v2080_v4 }
  0xd1   :  { %4305 = vst [vmem:[#allocation204_spill] sm:$0xff] %v2924_v50  ;;  %4306 = vst [vmem:[#allocation205_spill] sm:$0xff] %v2928_v59  ;;  %v2948_v50 = vmul.f32 %v2018_v52, %v2082_v62  ;;  %v2952_v59 = vmul.f32 %v2021_v53, %v2097_v23 }
  0xd2   :  { %4307 = vst [vmem:[#allocation206_spill] sm:$0xff] %v2932_v20  ;;  %4308 = vst [vmem:[#allocation207_spill] sm:$0xff] %v2936_v27  ;;  %v2956_v20 = vmul.f32 %v2015_v51, %v2099_v1  ;;  %v2960_v27 = vmul.f32 %v2018_v52, %v2101_v60 }
  0xd3   :  { %4309 = vst [vmem:[#allocation208_spill] sm:$0xff] %v2940_v48  ;;  %4310 = vst [vmem:[#allocation209_spill] sm:$0xff] %v2944_v49  ;;  %v2964_v48 = vmul.f32 %v2021_v53, %v2110_v19  ;;  %v2968_v49 = vmul.f32 %v2015_v51, %v2112_v5  ;;  %v2988_v51 = vmul.f32 %v2034_v58, %v2042_v61 }
  0xd4   :  { %4311 = vst [vmem:[#allocation210_spill] sm:$0xff] %v2948_v50  ;;  %4312 = vst [vmem:[#allocation211_spill] sm:$0xff] %v2952_v59  ;;  %v2972_v50 = vmul.f32 %v2018_v52, %v2114_v6  ;;  %v2976_v59 = vmul.f32 %v2021_v53, %v2132_v28  ;;  %v2992_v52 = vmul.f32 %v2024_v54, %v2044_v63 }
  0xd5   :  { %4313 = vst [vmem:[#allocation212_spill] sm:$0xff] %v2956_v20  ;;  %4314 = vst [vmem:[#allocation213_spill] sm:$0xff] %v2960_v27  ;;  %v2980_v20 = vmul.f32 %v2024_v54, %v2026_v55  ;;  %v2984_v27 = vmul.f32 %v2031_v57, %v2028_v56  ;;  %v2996_v53 = vmul.f32 %v2031_v57, %v2046_v0 }
  0xd6   :  { %4315 = vst [vmem:[#allocation214_spill] sm:$0xff] %v2968_v49  ;;  %4316 = vst [vmem:[#allocation215_spill] sm:$0xff] %v2972_v50 }
  0xd7   :  { %4317 = vst [vmem:[#allocation216_spill] sm:$0xff] %v2976_v59  ;;  %4318 = vst [vmem:[#allocation217_spill] sm:$0xff] %v2980_v20  ;;  %v3000_v59 = vmul.f32 %v2034_v58, %v2060_v8  ;;  %v3004_v20 = vmul.f32 %v2024_v54, %v2062_v9 }
  0xd8   :  { %4319 = vst [vmem:[#allocation218_spill] sm:$0xff] %v2984_v27  ;;  %4320 = vst [vmem:[#allocation219_spill] sm:$0xff] %v2988_v51  ;;  %v3008_v27 = vmul.f32 %v2031_v57, %v2064_v11  ;;  %v3012_v51 = vmul.f32 %v2034_v58, %v2078_v10 }
  0xd9   :  { %4321 = vst [vmem:[#allocation220_spill] sm:$0xff] %v2992_v52  ;;  %4322 = vst [vmem:[#allocation221_spill] sm:$0xff] %v2996_v53  ;;  %v3016_v52 = vmul.f32 %v2024_v54, %v2080_v4  ;;  %v3020_v53 = vmul.f32 %v2031_v57, %v2082_v62 }
  0xda   :  { %4323 = vst [vmem:[#allocation222_spill] sm:$0xff] %v3000_v59  ;;  %4324 = vst [vmem:[#allocation223_spill] sm:$0xff] %v3004_v20  ;;  %v3024_v59 = vmul.f32 %v2034_v58, %v2097_v23  ;;  %v3028_v20 = vmul.f32 %v2024_v54, %v2099_v1 }
  0xdb   :  { %4325 = vst [vmem:[#allocation224_spill] sm:$0xff] %v3008_v27  ;;  %4326 = vst [vmem:[#allocation225_spill] sm:$0xff] %v3012_v51  ;;  %v3032_v27 = vmul.f32 %v2031_v57, %v2101_v60  ;;  %v3036_v51 = vmul.f32 %v2034_v58, %v2110_v19 }
  0xdc   :  { %4327 = vst [vmem:[#allocation226_spill] sm:$0xff] %v3016_v52  ;;  %4328 = vst [vmem:[#allocation227_spill] sm:$0xff] %v3020_v53  ;;  %v3040_v52 = vmul.f32 %v2024_v54, %v2112_v5  ;;  %v3044_v53 = vmul.f32 %v2031_v57, %v2114_v6 }
  0xdd   :  { %4329 = vst [vmem:[#allocation228_spill] sm:$0xff] %v3024_v59  ;;  %4330 = vst [vmem:[#allocation229_spill] sm:$0xff] %v3028_v20  ;;  %v3048_v59 = vmul.f32 %v2034_v58, %v2132_v28  ;;  %v4336_v20 = vld [vmem:[#allocation21_spill] sm:$0xff] }
  0xde   :  { %4331 = vst [vmem:[#allocation230_spill] sm:$0xff] %v3032_v27  ;;  %4332 = vst [vmem:[#allocation231_spill] sm:$0xff] %v3036_v51  ;;  %v3052_v50 = vmul.f32 %v4336_v20, %v2026_v55  ;;  %v4338_v27 = vld [vmem:[#allocation22_spill] sm:$0xff]  ;;  %v4340_v51 = vld [vmem:[#allocation23_spill] sm:$0xff]  ;;  %v3064_v57 = vmul.f32 %v4336_v20, %v2044_v63 }
  0xdf   :  { %4333 = vst [vmem:[#allocation232_spill] sm:$0xff] %v3040_v52  ;;  %4334 = vst [vmem:[#allocation233_spill] sm:$0xff] %v3044_v53  ;;  %v3056_v49 = vmul.f32 %v4338_v27, %v2028_v56  ;;  %v3060_v54 = vmul.f32 %v4340_v51, %v2042_v61  ;;  %v3068_v58 = vmul.f32 %v4338_v27, %v2046_v0 }
  0xe0   :  { %4335 = vst [vmem:[#allocation234_spill] sm:$0xff] %v3048_v59  ;;  %4337 = vst [vmem:[#allocation21_spill] sm:$0xff] %v3052_v50  ;;  %v3072_v59 = vmul.f32 %v4340_v51, %v2060_v8  ;;  %v3076_v50 = vmul.f32 %v4336_v20, %v2062_v9 }
  0xe1   :  { %4339 = vst [vmem:[#allocation22_spill] sm:$0xff] %v3056_v49  ;;  %4341 = vst [vmem:[#allocation23_spill] sm:$0xff] %v3060_v54  ;;  %v3080_v49 = vmul.f32 %v4338_v27, %v2064_v11  ;;  %v3084_v54 = vmul.f32 %v4340_v51, %v2078_v10 }
  0xe2   :  { %4342 = vst [vmem:[#allocation235_spill] sm:$0xff] %v3064_v57  ;;  %4343 = vst [vmem:[#allocation236_spill] sm:$0xff] %v3068_v58  ;;  %v3088_v57 = vmul.f32 %v4336_v20, %v2080_v4  ;;  %v3092_v58 = vmul.f32 %v4338_v27, %v2082_v62 }
  0xe3   :  { %4344 = vst [vmem:[#allocation237_spill] sm:$0xff] %v3072_v59  ;;  %4345 = vst [vmem:[#allocation238_spill] sm:$0xff] %v3076_v50  ;;  %v3096_v59 = vmul.f32 %v4340_v51, %v2097_v23  ;;  %v3100_v50 = vmul.f32 %v4336_v20, %v2099_v1 }
  0xe4   :  { %4346 = vst [vmem:[#allocation239_spill] sm:$0xff] %v3080_v49  ;;  %4347 = vst [vmem:[#allocation240_spill] sm:$0xff] %v3084_v54  ;;  %v3104_v49 = vmul.f32 %v4338_v27, %v2101_v60  ;;  %v3108_v54 = vmul.f32 %v4340_v51, %v2110_v19 }
  0xe5   :  { %4348 = vst [vmem:[#allocation241_spill] sm:$0xff] %v3088_v57  ;;  %4349 = vst [vmem:[#allocation242_spill] sm:$0xff] %v3092_v58  ;;  %v3112_v57 = vmul.f32 %v4336_v20, %v2112_v5  ;;  %v3116_v58 = vmul.f32 %v4338_v27, %v2114_v6 }
  0xe6   :  { %4350 = vst [vmem:[#allocation243_spill] sm:$0xff] %v3096_v59  ;;  %4351 = vst [vmem:[#allocation244_spill] sm:$0xff] %v3100_v50  ;;  %v3120_v59 = vmul.f32 %v4340_v51, %v2132_v28  ;;  %v4357_v50 = vld [vmem:[#allocation24_spill] sm:$0xff] }
  0xe7   :  { %4352 = vst [vmem:[#allocation245_spill] sm:$0xff] %v3104_v49  ;;  %4353 = vst [vmem:[#allocation246_spill] sm:$0xff] %v3108_v54  ;;  %v3124_v53 = vmul.f32 %v4357_v50, %v2026_v55  ;;  %v4359_v49 = vld [vmem:[#allocation25_spill] sm:$0xff]  ;;  %v4361_v54 = vld [vmem:[#allocation26_spill] sm:$0xff]  ;;  %v3136_v27 = vmul.f32 %v4357_v50, %v2044_v63 }
  0xe8   :  { %4354 = vst [vmem:[#allocation247_spill] sm:$0xff] %v3112_v57  ;;  %4355 = vst [vmem:[#allocation248_spill] sm:$0xff] %v3116_v58  ;;  %v3128_v52 = vmul.f32 %v4359_v49, %v2028_v56  ;;  %v3132_v20 = vmul.f32 %v4361_v54, %v2042_v61  ;;  %v3140_v51 = vmul.f32 %v4359_v49, %v2046_v0 }
  0xe9   :  { %4356 = vst [vmem:[#allocation249_spill] sm:$0xff] %v3120_v59  ;;  %4358 = vst [vmem:[#allocation24_spill] sm:$0xff] %v3124_v53  ;;  %v3144_v59 = vmul.f32 %v4361_v54, %v2060_v8  ;;  %v3148_v53 = vmul.f32 %v4357_v50, %v2062_v9 }
  0xea   :  { %4360 = vst [vmem:[#allocation25_spill] sm:$0xff] %v3128_v52  ;;  %4362 = vst [vmem:[#allocation26_spill] sm:$0xff] %v3132_v20  ;;  %v3152_v52 = vmul.f32 %v4359_v49, %v2064_v11  ;;  %v3156_v20 = vmul.f32 %v4361_v54, %v2078_v10 }
  0xeb   :  { %4363 = vst [vmem:[#allocation250_spill] sm:$0xff] %v3136_v27  ;;  %4364 = vst [vmem:[#allocation251_spill] sm:$0xff] %v3140_v51  ;;  %v3160_v27 = vmul.f32 %v4357_v50, %v2080_v4  ;;  %v3164_v51 = vmul.f32 %v4359_v49, %v2082_v62 }
  0xec   :  { %4365 = vst [vmem:[#allocation252_spill] sm:$0xff] %v3144_v59  ;;  %4366 = vst [vmem:[#allocation253_spill] sm:$0xff] %v3148_v53  ;;  %v3168_v59 = vmul.f32 %v4361_v54, %v2097_v23  ;;  %v3172_v53 = vmul.f32 %v4357_v50, %v2099_v1 }
  0xed   :  { %4367 = vst [vmem:[#allocation254_spill] sm:$0xff] %v3152_v52  ;;  %4368 = vst [vmem:[#allocation255_spill] sm:$0xff] %v3156_v20  ;;  %v3176_v52 = vmul.f32 %v4359_v49, %v2101_v60  ;;  %v3180_v20 = vmul.f32 %v4361_v54, %v2110_v19 }
  0xee   :  { %4369 = vst [vmem:[#allocation256_spill] sm:$0xff] %v3160_v27  ;;  %4370 = vst [vmem:[#allocation257_spill] sm:$0xff] %v3164_v51  ;;  %v3184_v27 = vmul.f32 %v4357_v50, %v2112_v5  ;;  %v3188_v51 = vmul.f32 %v4359_v49, %v2114_v6 }
  0xef   :  { %4371 = vst [vmem:[#allocation258_spill] sm:$0xff] %v3168_v59  ;;  %4372 = vst [vmem:[#allocation259_spill] sm:$0xff] %v3172_v53  ;;  %v3192_v59 = vmul.f32 %v4361_v54, %v2132_v28  ;;  %v4377_v53 = vld [vmem:[#allocation27_spill] sm:$0xff] }
  0xf0   :  { %4373 = vst [vmem:[#allocation260_spill] sm:$0xff] %v3176_v52  ;;  %4374 = vst [vmem:[#allocation261_spill] sm:$0xff] %v3180_v20  ;;  %v3196_v58 = vmul.f32 %v4377_v53, %v2026_v55  ;;  %v4379_v52 = vld [vmem:[#allocation28_spill] sm:$0xff]  ;;  %v4381_v20 = vld [vmem:[#allocation29_spill] sm:$0xff]  ;;  %v3208_v49 = vmul.f32 %v4377_v53, %v2044_v63 }
  0xf1   :  { %4375 = vst [vmem:[#allocation262_spill] sm:$0xff] %v3188_v51  ;;  %4376 = vst [vmem:[#allocation263_spill] sm:$0xff] %v3192_v59  ;;  %v3200_v57 = vmul.f32 %v4379_v52, %v2028_v56  ;;  %v3204_v50 = vmul.f32 %v4381_v20, %v2042_v61  ;;  %v3212_v54 = vmul.f32 %v4379_v52, %v2046_v0 }
  0xf2   :  { %4378 = vst [vmem:[#allocation27_spill] sm:$0xff] %v3196_v58  ;;  %4383 = vst [vmem:[#allocation264_spill] sm:$0xff] %v3208_v49  ;;  %v3216_v59 = vmul.f32 %v4381_v20, %v2060_v8  ;;  %v3220_v58 = vmul.f32 %v4377_v53, %v2062_v9  ;;  %v3232_v49 = vmul.f32 %v4377_v53, %v2080_v4 }
  0xf3   :  { %4380 = vst [vmem:[#allocation28_spill] sm:$0xff] %v3200_v57  ;;  %4382 = vst [vmem:[#allocation29_spill] sm:$0xff] %v3204_v50  ;;  %v3224_v57 = vmul.f32 %v4379_v52, %v2064_v11  ;;  %v3228_v50 = vmul.f32 %v4381_v20, %v2078_v10 }
  0xf4   :  { %4384 = vst [vmem:[#allocation265_spill] sm:$0xff] %v3212_v54  ;;  %4385 = vst [vmem:[#allocation266_spill] sm:$0xff] %v3216_v59  ;;  %v3236_v54 = vmul.f32 %v4379_v52, %v2082_v62  ;;  %v3240_v59 = vmul.f32 %v4381_v20, %v2097_v23 }
  0xf5   :  { %4386 = vst [vmem:[#allocation267_spill] sm:$0xff] %v3220_v58  ;;  %4387 = vst [vmem:[#allocation268_spill] sm:$0xff] %v3224_v57  ;;  %v3244_v58 = vmul.f32 %v4377_v53, %v2099_v1  ;;  %v3248_v57 = vmul.f32 %v4379_v52, %v2101_v60 }
  0xf6   :  { %4388 = vst [vmem:[#allocation269_spill] sm:$0xff] %v3228_v50  ;;  %4389 = vst [vmem:[#allocation270_spill] sm:$0xff] %v3232_v49  ;;  %v3252_v50 = vmul.f32 %v4381_v20, %v2110_v19  ;;  %v3256_v49 = vmul.f32 %v4377_v53, %v2112_v5  ;;  %v4401_v53 = vld [vmem:[#allocation31_spill] sm:$0xff] }
  0xf7   :  { %4390 = vst [vmem:[#allocation271_spill] sm:$0xff] %v3236_v54  ;;  %4391 = vst [vmem:[#allocation272_spill] sm:$0xff] %v3240_v59  ;;  %v3260_v54 = vmul.f32 %v4379_v52, %v2114_v6  ;;  %v3264_v59 = vmul.f32 %v4381_v20, %v2132_v28  ;;  %v3286_v20 = vmul.f32 %v2085_v3, %v2046_v0 }
  0xf8   :  { %4392 = vst [vmem:[#allocation273_spill] sm:$0xff] %v3244_v58  ;;  %4393 = vst [vmem:[#allocation274_spill] sm:$0xff] %v3248_v57  ;;  %v4398_v58 = vld [vmem:[#allocation30_spill] sm:$0xff] }
  0xf9   :  { %4394 = vst [vmem:[#allocation275_spill] sm:$0xff] %v3252_v50  ;;  %4395 = vst [vmem:[#allocation276_spill] sm:$0xff] %v3256_v49  ;;  %v3268_v51 = vmul.f32 %v4398_v58, %v2026_v55  ;;  %v3274_v50 = vmul.f32 %v2085_v3, %v2028_v56  ;;  %v3278_v49 = vmul.f32 %v4401_v53, %v2042_v61 }
  0xfa   :  { %4396 = vst [vmem:[#allocation277_spill] sm:$0xff] %v3260_v54  ;;  %4397 = vst [vmem:[#allocation278_spill] sm:$0xff] %v3264_v59  ;;  %v3282_v52 = vmul.f32 %v4398_v58, %v2044_v63  ;;  %v3294_v59 = vmul.f32 %v4398_v58, %v2062_v9 }
  0xfb   :  { %4399 = vst [vmem:[#allocation30_spill] sm:$0xff] %v3268_v51  ;;  %4400 = vst [vmem:[#allocation279_spill] sm:$0xff] %v3274_v50  ;;  %v3290_v51 = vmul.f32 %v4401_v53, %v2060_v8  ;;  %v3298_v50 = vmul.f32 %v2085_v3, %v2064_v11 }
  0xfc   :  { %4402 = vst [vmem:[#allocation31_spill] sm:$0xff] %v3278_v49  ;;  %4403 = vst [vmem:[#allocation280_spill] sm:$0xff] %v3282_v52  ;;  %v3302_v49 = vmul.f32 %v4401_v53, %v2078_v10  ;;  %v3306_v52 = vmul.f32 %v4398_v58, %v2080_v4 }
  0xfd   :  { %4404 = vst [vmem:[#allocation281_spill] sm:$0xff] %v3286_v20  ;;  %4405 = vst [vmem:[#allocation282_spill] sm:$0xff] %v3290_v51  ;;  %v3310_v20 = vmul.f32 %v2085_v3, %v2082_v62  ;;  %v3314_v51 = vmul.f32 %v4401_v53, %v2097_v23 }
  0xfe   :  { %4406 = vst [vmem:[#allocation283_spill] sm:$0xff] %v3294_v59  ;;  %4407 = vst [vmem:[#allocation284_spill] sm:$0xff] %v3298_v50  ;;  %v3318_v59 = vmul.f32 %v4398_v58, %v2099_v1  ;;  %v3322_v50 = vmul.f32 %v2085_v3, %v2101_v60 }
  0xff   :  { %4408 = vst [vmem:[#allocation285_spill] sm:$0xff] %v3302_v49  ;;  %4409 = vst [vmem:[#allocation286_spill] sm:$0xff] %v3306_v52  ;;  %v3326_v49 = vmul.f32 %v4401_v53, %v2110_v19  ;;  %v3330_v52 = vmul.f32 %v4398_v58, %v2112_v5 }
 0x100   :  { %4410 = vst [vmem:[#allocation287_spill] sm:$0xff] %v3310_v20  ;;  %4411 = vst [vmem:[#allocation288_spill] sm:$0xff] %v3314_v51  ;;  %v3334_v20 = vmul.f32 %v2085_v3, %v2114_v6  ;;  %v3338_v51 = vmul.f32 %v4401_v53, %v2132_v28 }
 0x101   :  { %4412 = vst [vmem:[#allocation289_spill] sm:$0xff] %v3318_v59  ;;  %4413 = vst [vmem:[#allocation290_spill] sm:$0xff] %v3322_v50  ;;  %v4415_v59 = vld [vmem:[#allocation32_spill] sm:$0xff]  ;;  %v4416_v50 = vld [vmem:[#allocation33_spill] sm:$0xff] }
 0x102   :  { %4414 = vst [vmem:[#allocation291_spill] sm:$0xff] %v3326_v49  ;;  %v3342_v54 = vmul.f32 %v4415_v59, %v2026_v55  ;;  %v3346_v57 = vmul.f32 %v4416_v50, %v2028_v56  ;;  %v4417_v49 = vld [vmem:[#allocation34_spill] sm:$0xff]  ;;  %v3354_v3 = vmul.f32 %v4415_v59, %v2044_v63  ;;  %v3358_v53 = vmul.f32 %v4416_v50, %v2046_v0 }
 0x103   :  { %v3350_v58 = vmul.f32 %v4417_v49, %v2042_v61  ;;  %v3362_v55 = vmul.f32 %v4417_v49, %v2060_v8  ;;  %v3366_v56 = vmul.f32 %v4415_v59, %v2062_v9  ;;  %v3370_v61 = vmul.f32 %v4416_v50, %v2064_v11 }
 0x104   :  { %v3374_v63 = vmul.f32 %v4417_v49, %v2078_v10  ;;  %v3378_v0 = vmul.f32 %v4415_v59, %v2080_v4  ;;  %v3382_v8 = vmul.f32 %v4416_v50, %v2082_v62  ;;  %v3386_v9 = vmul.f32 %v4417_v49, %v2097_v23 }
 0x105   :  { %4418 = vst [vmem:[#allocation32_spill] sm:$0xff] %v3362_v55  ;;  %4419 = vst [vmem:[#allocation33_spill] sm:$0xff] %v3366_v56  ;;  %v3390_v11 = vmul.f32 %v4415_v59, %v2099_v1  ;;  %v3394_v10 = vmul.f32 %v4416_v50, %v2101_v60  ;;  %v3398_v4 = vmul.f32 %v4417_v49, %v2110_v19  ;;  %v4431_v60 = vld [vmem:[#allocation35_spill] sm:$0xff]  ;;  %v4442_v56 = vld [vmem:[#allocation46_spill] sm:$0xff] }
 0x106   :  { %4420 = vst [vmem:[#allocation34_spill] sm:$0xff] %v3370_v61  ;;  %4421 = vst [vmem:[#allocation292_spill] sm:$0xff] %v3374_v63  ;;  %v3402_v62 = vmul.f32 %v4415_v59, %v2112_v5  ;;  %v3406_v23 = vmul.f32 %v4416_v50, %v2114_v6  ;;  %v3410_v1 = vmul.f32 %v4417_v49, %v2132_v28  ;;  %v4434_v5 = vld [vmem:[#allocation38_spill] sm:$0xff]  ;;  %v4435_v6 = vld [vmem:[#allocation39_spill] sm:$0xff] }
 0x107   :  { %4422 = vst [vmem:[#allocation293_spill] sm:$0xff] %v3378_v0  ;;  %4423 = vst [vmem:[#allocation294_spill] sm:$0xff] %v3382_v8  ;;  %v4437_v49 = vld [vmem:[#allocation41_spill] sm:$0xff]  ;;  %v4438_v8 = vld [vmem:[#allocation42_spill] sm:$0xff] }
 0x108   :  { %4424 = vst [vmem:[#allocation295_spill] sm:$0xff] %v3386_v9  ;;  %4425 = vst [vmem:[#allocation296_spill] sm:$0xff] %v3390_v11  ;;  %v3413_v11 = vstv %s3270_s0  ;;  %v4432_v9 = vld [vmem:[#allocation36_spill] sm:$0xff]  ;;  %v4439_v0 = vld [vmem:[#allocation43_spill] sm:$0xff] }
 0x109   :  { %4426 = vst [vmem:[#allocation297_spill] sm:$0xff] %v3394_v10  ;;  %4427 = vst [vmem:[#allocation298_spill] sm:$0xff] %v3398_v4  ;;  %v936_v10 = vadd.f32 %v3413_v11, %v4431_v60  ;;  %v937_v19 = vadd.f32 %v3413_v11, %v4432_v9  ;;  %v4433_v4 = vld [vmem:[#allocation37_spill] sm:$0xff]  ;;  %v940_v50 = vadd.f32 %v3413_v11, %v4435_v6  ;;  %v4440_v63 = vld [vmem:[#allocation44_spill] sm:$0xff] }
 0x10a   :  { %4428 = vst [vmem:[#allocation299_spill] sm:$0xff] %v3402_v62  ;;  %4429 = vst [vmem:[#allocation300_spill] sm:$0xff] %v3406_v23  ;;  %v938_v59 = vadd.f32 %v3413_v11, %v4433_v4  ;;  %v939_v62 = vadd.f32 %v3413_v11, %v4434_v5  ;;  %v4436_v23 = vld [vmem:[#allocation40_spill] sm:$0xff]  ;;  %v943_v60 = vadd.f32 %v3413_v11, %v4438_v8  ;;  %v4441_v61 = vld [vmem:[#allocation45_spill] sm:$0xff] }
 0x10b   :  { %4430 = vst [vmem:[#allocation301_spill] sm:$0xff] %v3410_v1  ;;  %v941_v28 = vadd.f32 %v3413_v11, %v4436_v23  ;;  %v942_v1 = vadd.f32 %v3413_v11, %v4437_v49  ;;  %v944_v9 = vadd.f32 %v3413_v11, %v4439_v0  ;;  %v945_v4 = vadd.f32 %v3413_v11, %v4440_v63  ;;  %v4443_v23 = vld [vmem:[#allocation47_spill] sm:$0xff]  ;;  %v4444_v8 = vld [vmem:[#allocation48_spill] sm:$0xff] }
 0x10c   :  { %v946_v5 = vadd.f32 %v3413_v11, %v4441_v61  ;;  %v947_v6 = vadd.f32 %v3413_v11, %v4442_v56  ;;  %1260 = vst [vmem:[#allocation12] sm:$0xff] %v936_v10  ;;  %1261 = vst [vmem:[#allocation12 + $0x8] sm:$0xff] %v937_v19  ;;  %v948_v49 = vadd.f32 %v3413_v11, %v4443_v23  ;;  %v4445_v61 = vld [vmem:[#allocation49_spill] sm:$0xff] }
 0x10d   :  { %1262 = vst [vmem:[#allocation12 + $0x10] sm:$0xff] %v938_v59  ;;  %1263 = vst [vmem:[#allocation12 + $0x18] sm:$0xff] %v939_v62  ;;  %v949_v55 = vadd.f32 %v3413_v11, %v4444_v8  ;;  %v950_v0 = vadd.f32 %v3413_v11, %v2172_v7  ;;  %v951_v63 = vadd.f32 %v3413_v11, %v2176_v29  ;;  %v4446_v62 = vld [vmem:[#allocation50_spill] sm:$0xff]  ;;  %v4447_v59 = vld [vmem:[#allocation51_spill] sm:$0xff] }
 0x10e   :  { %1264 = vst [vmem:[#allocation12 + $0x20] sm:$0xff] %v940_v50  ;;  %1265 = vst [vmem:[#allocation12 + $0x28] sm:$0xff] %v941_v28  ;;  %v952_v56 = vadd.f32 %v3413_v11, %v2180_v2  ;;  %v953_v10 = vadd.f32 %v3413_v11, %v4445_v61  ;;  %v954_v19 = vadd.f32 %v3413_v11, %v4446_v62  ;;  %v4448_v7 = vld [vmem:[#allocation52_spill] sm:$0xff]  ;;  %v4450_v2 = vld [vmem:[#allocation54_spill] sm:$0xff] }
 0x10f   :  { %1266 = vst [vmem:[#allocation12 + $0x30] sm:$0xff] %v942_v1  ;;  %1267 = vst [vmem:[#allocation12 + $0x38] sm:$0xff] %v943_v60  ;;  %v955_v23 = vadd.f32 %v3413_v11, %v4447_v59  ;;  %v956_v29 = vadd.f32 %v3413_v11, %v4448_v7  ;;  %v4449_v1 = vld [vmem:[#allocation53_spill] sm:$0xff]  ;;  %v958_v28 = vadd.f32 %v3413_v11, %v4450_v2  ;;  %v4451_v60 = vld [vmem:[#allocation55_spill] sm:$0xff] }
 0x110   :  { %1268 = vst [vmem:[#allocation12 + $0x40] sm:$0xff] %v944_v9  ;;  %1269 = vst [vmem:[#allocation12 + $0x48] sm:$0xff] %v945_v4  ;;  %v957_v50 = vadd.f32 %v3413_v11, %v4449_v1  ;;  %v959_v8 = vadd.f32 %v3413_v11, %v4451_v60  ;;  %v4452_v9 = vld [vmem:[#allocation56_spill] sm:$0xff]  ;;  %v4454_v61 = vld [vmem:[#allocation58_spill] sm:$0xff] }
 0x111   :  { %1270 = vst [vmem:[#allocation12 + $0x50] sm:$0xff] %v946_v5  ;;  %1271 = vst [vmem:[#allocation12 + $0x58] sm:$0xff] %v947_v6  ;;  %v960_v4 = vadd.f32 %v3413_v11, %v4452_v9  ;;  %v4453_v5 = vld [vmem:[#allocation57_spill] sm:$0xff]  ;;  %v962_v62 = vadd.f32 %v3413_v11, %v4454_v61  ;;  %v4455_v59 = vld [vmem:[#allocation59_spill] sm:$0xff] }
 0x112   :  { %1272 = vst [vmem:[#allocation12 + $0x60] sm:$0xff] %v948_v49  ;;  %1273 = vst [vmem:[#allocation12 + $0x68] sm:$0xff] %v949_v55  ;;  %v961_v6 = vadd.f32 %v3413_v11, %v4453_v5  ;;  %v963_v7 = vadd.f32 %v3413_v11, %v4455_v59  ;;  %v4456_v49 = vld [vmem:[#allocation60_spill] sm:$0xff]  ;;  %v4458_v1 = vld [vmem:[#allocation62_spill] sm:$0xff] }
 0x113   :  { %1274 = vst [vmem:[#allocation12 + $0x70] sm:$0xff] %v950_v0  ;;  %1275 = vst [vmem:[#allocation12 + $0x78] sm:$0xff] %v951_v63  ;;  %v964_v55 = vadd.f32 %v3413_v11, %v4456_v49  ;;  %v4457_v0 = vld [vmem:[#allocation61_spill] sm:$0xff]  ;;  %v966_v2 = vadd.f32 %v3413_v11, %v4458_v1  ;;  %v4459_v60 = vld [vmem:[#allocation63_spill] sm:$0xff] }
 0x114   :  { %1276 = vst [vmem:[#allocation12 + $0x80] sm:$0xff] %v952_v56  ;;  %1277 = vst [vmem:[#allocation12 + $0x88] sm:$0xff] %v953_v10  ;;  %v965_v63 = vadd.f32 %v3413_v11, %v4457_v0  ;;  %v967_v9 = vadd.f32 %v3413_v11, %v4459_v60  ;;  %v968_v56 = vadd.f32 %v3413_v11, %v2244_v12  ;;  %v4463_v12 = vld [vmem:[#allocation67_spill] sm:$0xff]  ;;  %v4468_v0 = vld [vmem:[#allocation72_spill] sm:$0xff] }
 0x115   :  { %1278 = vst [vmem:[#allocation12 + $0x90] sm:$0xff] %v954_v19  ;;  %1279 = vst [vmem:[#allocation12 + $0x98] sm:$0xff] %v955_v23  ;;  %v969_v10 = vadd.f32 %v3413_v11, %v2248_v13  ;;  %v970_v19 = vadd.f32 %v3413_v11, %v2252_v14  ;;  %v4460_v23 = vld [vmem:[#allocation64_spill] sm:$0xff]  ;;  %v974_v61 = vadd.f32 %v3413_v11, %v4463_v12  ;;  %v4465_v14 = vld [vmem:[#allocation69_spill] sm:$0xff] }
 0x116   :  { %1280 = vst [vmem:[#allocation12 + $0xa0] sm:$0xff] %v956_v29  ;;  %1281 = vst [vmem:[#allocation12 + $0xa8] sm:$0xff] %v957_v50  ;;  %v971_v5 = vadd.f32 %v3413_v11, %v4460_v23  ;;  %v4461_v29 = vld [vmem:[#allocation65_spill] sm:$0xff]  ;;  %v4464_v13 = vld [vmem:[#allocation68_spill] sm:$0xff]  ;;  %v979_v1 = vadd.f32 %v3413_v11, %v4468_v0  ;;  %v986_v12 = vadd.f32 %v3413_v11, %v2316_v15 }
 0x117   :  { %1282 = vst [vmem:[#allocation12 + $0xb0] sm:$0xff] %v958_v28  ;;  %1283 = vst [vmem:[#allocation12 + $0xb8] sm:$0xff] %v959_v8  ;;  %v972_v50 = vadd.f32 %v3413_v11, %v4461_v29  ;;  %v4462_v28 = vld [vmem:[#allocation66_spill] sm:$0xff]  ;;  %v975_v59 = vadd.f32 %v3413_v11, %v4464_v13  ;;  %v4472_v29 = vld [vmem:[#allocation76_spill] sm:$0xff]  ;;  %v987_v13 = vadd.f32 %v3413_v11, %v2320_v16 }
 0x118   :  { %1284 = vst [vmem:[#allocation12 + $0xc0] sm:$0xff] %v960_v4  ;;  %1285 = vst [vmem:[#allocation12 + $0xc8] sm:$0xff] %v961_v6  ;;  %v973_v8 = vadd.f32 %v3413_v11, %v4462_v28  ;;  %v976_v4 = vadd.f32 %v3413_v11, %v4465_v14  ;;  %v4466_v6 = vld [vmem:[#allocation70_spill] sm:$0xff]  ;;  %v983_v28 = vadd.f32 %v3413_v11, %v4472_v29  ;;  %v4481_v0 = vld [vmem:[#allocation85_spill] sm:$0xff] }
 0x119   :  { %1286 = vst [vmem:[#allocation12 + $0xd0] sm:$0xff] %v962_v62  ;;  %1287 = vst [vmem:[#allocation12 + $0xd8] sm:$0xff] %v963_v7  ;;  %v977_v62 = vadd.f32 %v3413_v11, %v4466_v6  ;;  %v4467_v7 = vld [vmem:[#allocation71_spill] sm:$0xff]  ;;  %v4477_v6 = vld [vmem:[#allocation81_spill] sm:$0xff] }
 0x11a   :  { %1288 = vst [vmem:[#allocation12 + $0xe0] sm:$0xff] %v964_v55  ;;  %1289 = vst [vmem:[#allocation12 + $0xe8] sm:$0xff] %v965_v63  ;;  %v978_v49 = vadd.f32 %v3413_v11, %v4467_v7  ;;  %v4469_v55 = vld [vmem:[#allocation73_spill] sm:$0xff]  ;;  %v991_v7 = vadd.f32 %v3413_v11, %v4477_v6  ;;  %v4478_v15 = vld [vmem:[#allocation82_spill] sm:$0xff] }
 0x11b   :  { %1290 = vst [vmem:[#allocation12 + $0xf0] sm:$0xff] %v966_v2  ;;  %1291 = vst [vmem:[#allocation12 + $0xf8] sm:$0xff] %v967_v9  ;;  %v980_v63 = vadd.f32 %v3413_v11, %v4469_v55  ;;  %v4470_v2 = vld [vmem:[#allocation74_spill] sm:$0xff]  ;;  %v4471_v9 = vld [vmem:[#allocation75_spill] sm:$0xff]  ;;  %v992_v16 = vadd.f32 %v3413_v11, %v4478_v15 }
 0x11c   :  { %1292 = vst [vmem:[#allocation12 + $0x100] sm:$0xff] %v968_v56  ;;  %1293 = vst [vmem:[#allocation12 + $0x108] sm:$0xff] %v969_v10  ;;  %v981_v60 = vadd.f32 %v3413_v11, %v4470_v2  ;;  %v982_v23 = vadd.f32 %v3413_v11, %v4471_v9  ;;  %v4473_v56 = vld [vmem:[#allocation77_spill] sm:$0xff]  ;;  %v4482_v55 = vld [vmem:[#allocation86_spill] sm:$0xff] }
 0x11d   :  { %1294 = vst [vmem:[#allocation12 + $0x110] sm:$0xff] %v970_v19  ;;  %1295 = vst [vmem:[#allocation12 + $0x118] sm:$0xff] %v971_v5  ;;  %v984_v10 = vadd.f32 %v3413_v11, %v4473_v56  ;;  %v4474_v19 = vld [vmem:[#allocation78_spill] sm:$0xff]  ;;  %v4483_v2 = vld [vmem:[#allocation87_spill] sm:$0xff] }
 0x11e   :  { %1296 = vst [vmem:[#allocation12 + $0x120] sm:$0xff] %v972_v50  ;;  %1297 = vst [vmem:[#allocation12 + $0x128] sm:$0xff] %v973_v8  ;;  %v985_v5 = vadd.f32 %v3413_v11, %v4474_v19  ;;  %v988_v50 = vadd.f32 %v3413_v11, %v2324_v17  ;;  %v4475_v8 = vld [vmem:[#allocation79_spill] sm:$0xff]  ;;  %v4480_v17 = vld [vmem:[#allocation84_spill] sm:$0xff] }
 0x11f   :  { %1298 = vst [vmem:[#allocation12 + $0x130] sm:$0xff] %v974_v61  ;;  %1299 = vst [vmem:[#allocation12 + $0x138] sm:$0xff] %v975_v59  ;;  %v989_v61 = vadd.f32 %v3413_v11, %v4475_v8  ;;  %v4476_v59 = vld [vmem:[#allocation80_spill] sm:$0xff]  ;;  %v4485_v29 = vld [vmem:[#allocation89_spill] sm:$0xff] }
 0x120   :  { %1300 = vst [vmem:[#allocation12 + $0x140] sm:$0xff] %v976_v4  ;;  %1301 = vst [vmem:[#allocation12 + $0x148] sm:$0xff] %v977_v62  ;;  %v990_v14 = vadd.f32 %v3413_v11, %v4476_v59  ;;  %v4479_v4 = vld [vmem:[#allocation83_spill] sm:$0xff]  ;;  %v4484_v9 = vld [vmem:[#allocation88_spill] sm:$0xff] }
 0x121   :  { %1302 = vst [vmem:[#allocation12 + $0x150] sm:$0xff] %v978_v49  ;;  %1303 = vst [vmem:[#allocation12 + $0x158] sm:$0xff] %v979_v1  ;;  %v993_v62 = vadd.f32 %v3413_v11, %v4479_v4  ;;  %v994_v49 = vadd.f32 %v3413_v11, %v4480_v17  ;;  %v995_v1 = vadd.f32 %v3413_v11, %v4481_v0  ;;  %v4486_v56 = vld [vmem:[#allocation90_spill] sm:$0xff]  ;;  %v4487_v19 = vld [vmem:[#allocation91_spill] sm:$0xff] }
 0x122   :  { %1304 = vst [vmem:[#allocation12 + $0x160] sm:$0xff] %v980_v63  ;;  %1305 = vst [vmem:[#allocation12 + $0x168] sm:$0xff] %v981_v60  ;;  %v996_v63 = vadd.f32 %v3413_v11, %v4482_v55  ;;  %v997_v60 = vadd.f32 %v3413_v11, %v4483_v2  ;;  %v4489_v8 = vld [vmem:[#allocation93_spill] sm:$0xff]  ;;  %v4490_v6 = vld [vmem:[#allocation94_spill] sm:$0xff] }
 0x123   :  { %1306 = vst [vmem:[#allocation12 + $0x170] sm:$0xff] %v982_v23  ;;  %1307 = vst [vmem:[#allocation12 + $0x178] sm:$0xff] %v983_v28  ;;  %v998_v23 = vadd.f32 %v3413_v11, %v4484_v9  ;;  %v999_v28 = vadd.f32 %v3413_v11, %v4485_v29  ;;  %v1003_v59 = vadd.f32 %v3413_v11, %v4489_v8  ;;  %v4491_v15 = vld [vmem:[#allocation95_spill] sm:$0xff]  ;;  %v4492_v4 = vld [vmem:[#allocation96_spill] sm:$0xff] }
 0x124   :  { %1308 = vst [vmem:[#allocation12 + $0x180] sm:$0xff] %v984_v10  ;;  %1309 = vst [vmem:[#allocation12 + $0x188] sm:$0xff] %v985_v5  ;;  %v1000_v10 = vadd.f32 %v3413_v11, %v4486_v56  ;;  %v1001_v5 = vadd.f32 %v3413_v11, %v4487_v19 }
 0x125   :  { %1310 = vst [vmem:[#allocation12 + $0x190] sm:$0xff] %v986_v12  ;;  %1311 = vst [vmem:[#allocation12 + $0x198] sm:$0xff] %v987_v13  ;;  %v4488_v12 = vld [vmem:[#allocation92_spill] sm:$0xff] }
 0x126   :  { %1312 = vst [vmem:[#allocation12 + $0x1a0] sm:$0xff] %v988_v50  ;;  %1313 = vst [vmem:[#allocation12 + $0x1a8] sm:$0xff] %v989_v61  ;;  %v1002_v13 = vadd.f32 %v3413_v11, %v4488_v12  ;;  %v1004_v50 = vadd.f32 %v3413_v11, %v2388_v18  ;;  %v1005_v61 = vadd.f32 %v3413_v11, %v2392_v21  ;;  %v4493_v18 = vld [vmem:[#allocation97_spill] sm:$0xff]  ;;  %v4494_v21 = vld [vmem:[#allocation98_spill] sm:$0xff] }
 0x127   :  { %1314 = vst [vmem:[#allocation12 + $0x1b0] sm:$0xff] %v990_v14  ;;  %1315 = vst [vmem:[#allocation12 + $0x1b8] sm:$0xff] %v991_v7  ;;  %v1006_v14 = vadd.f32 %v3413_v11, %v2396_v22  ;;  %v1007_v7 = vadd.f32 %v3413_v11, %v4490_v6  ;;  %v1010_v17 = vadd.f32 %v3413_v11, %v4493_v18  ;;  %v4495_v22 = vld [vmem:[#allocation99_spill] sm:$0xff] }
 0x128   :  { %1316 = vst [vmem:[#allocation12 + $0x1c0] sm:$0xff] %v992_v16  ;;  %1317 = vst [vmem:[#allocation12 + $0x1c8] sm:$0xff] %v993_v62  ;;  %v1008_v16 = vadd.f32 %v3413_v11, %v4491_v15  ;;  %v1009_v62 = vadd.f32 %v3413_v11, %v4492_v4  ;;  %v1012_v0 = vadd.f32 %v3413_v11, %v4495_v22  ;;  %v4511_v22 = vld [vmem:[#allocation115_spill] sm:$0xff] }
 0x129   :  { %1318 = vst [vmem:[#allocation12 + $0x1d0] sm:$0xff] %v994_v49  ;;  %1319 = vst [vmem:[#allocation12 + $0x1d8] sm:$0xff] %v995_v1  ;;  %v1011_v49 = vadd.f32 %v3413_v11, %v4494_v21  ;;  %v4496_v1 = vld [vmem:[#allocation100_spill] sm:$0xff]  ;;  %v1024_v6 = vadd.f32 %v3413_v11, %v2468_v26  ;;  %v4510_v26 = vld [vmem:[#allocation114_spill] sm:$0xff] }
 0x12a   :  { %1320 = vst [vmem:[#allocation12 + $0x1e0] sm:$0xff] %v996_v63  ;;  %1321 = vst [vmem:[#allocation12 + $0x1e8] sm:$0xff] %v997_v60  ;;  %v1013_v55 = vadd.f32 %v3413_v11, %v4496_v1  ;;  %v4497_v63 = vld [vmem:[#allocation101_spill] sm:$0xff]  ;;  %v4498_v60 = vld [vmem:[#allocation102_spill] sm:$0xff] }
 0x12b   :  { %1322 = vst [vmem:[#allocation12 + $0x1f0] sm:$0xff] %v998_v23  ;;  %1323 = vst [vmem:[#allocation12 + $0x1f8] sm:$0xff] %v999_v28  ;;  %v1014_v2 = vadd.f32 %v3413_v11, %v4497_v63  ;;  %v1015_v9 = vadd.f32 %v3413_v11, %v4498_v60  ;;  %v4499_v23 = vld [vmem:[#allocation103_spill] sm:$0xff]  ;;  %v4500_v28 = vld [vmem:[#allocation104_spill] sm:$0xff] }
 0x12c   :  { %1324 = vst [vmem:[#allocation12 + $0x200] sm:$0xff] %v1000_v10  ;;  %1325 = vst [vmem:[#allocation12 + $0x208] sm:$0xff] %v1001_v5  ;;  %v1016_v29 = vadd.f32 %v3413_v11, %v4499_v23  ;;  %v1017_v56 = vadd.f32 %v3413_v11, %v4500_v28  ;;  %v4501_v10 = vld [vmem:[#allocation105_spill] sm:$0xff]  ;;  %v4502_v5 = vld [vmem:[#allocation106_spill] sm:$0xff] }
 0x12d   :  { %1326 = vst [vmem:[#allocation12 + $0x210] sm:$0xff] %v1002_v13  ;;  %1327 = vst [vmem:[#allocation12 + $0x218] sm:$0xff] %v1003_v59  ;;  %v1018_v19 = vadd.f32 %v3413_v11, %v4501_v10  ;;  %v1019_v12 = vadd.f32 %v3413_v11, %v4502_v5  ;;  %v4503_v13 = vld [vmem:[#allocation107_spill] sm:$0xff]  ;;  %v4504_v59 = vld [vmem:[#allocation108_spill] sm:$0xff] }
 0x12e   :  { %1328 = vst [vmem:[#allocation12 + $0x220] sm:$0xff] %v1004_v50  ;;  %1329 = vst [vmem:[#allocation12 + $0x228] sm:$0xff] %v1005_v61  ;;  %v1020_v8 = vadd.f32 %v3413_v11, %v4503_v13  ;;  %v1021_v50 = vadd.f32 %v3413_v11, %v4504_v59  ;;  %v1022_v61 = vadd.f32 %v3413_v11, %v2460_v24  ;;  %v4508_v24 = vld [vmem:[#allocation112_spill] sm:$0xff]  ;;  %v4513_v63 = vld [vmem:[#allocation117_spill] sm:$0xff] }
 0x12f   :  { %1330 = vst [vmem:[#allocation12 + $0x230] sm:$0xff] %v1006_v14  ;;  %1331 = vst [vmem:[#allocation12 + $0x238] sm:$0xff] %v1007_v7  ;;  %v1023_v14 = vadd.f32 %v3413_v11, %v2464_v25  ;;  %v4505_v7 = vld [vmem:[#allocation109_spill] sm:$0xff]  ;;  %v1028_v25 = vadd.f32 %v3413_v11, %v4508_v24  ;;  %v4512_v1 = vld [vmem:[#allocation116_spill] sm:$0xff]  ;;  %v1040_v59 = vadd.f32 %v3413_v11, %v2532_v30 }
 0x130   :  { %1332 = vst [vmem:[#allocation12 + $0x240] sm:$0xff] %v1008_v16  ;;  %1333 = vst [vmem:[#allocation12 + $0x248] sm:$0xff] %v1009_v62  ;;  %v1025_v15 = vadd.f32 %v3413_v11, %v4505_v7  ;;  %v4506_v16 = vld [vmem:[#allocation110_spill] sm:$0xff]  ;;  %v4507_v62 = vld [vmem:[#allocation111_spill] sm:$0xff] }
 0x131   :  { %1334 = vst [vmem:[#allocation12 + $0x250] sm:$0xff] %v1010_v17  ;;  %1335 = vst [vmem:[#allocation12 + $0x258] sm:$0xff] %v1011_v49  ;;  %v1026_v4 = vadd.f32 %v3413_v11, %v4506_v16  ;;  %v1027_v18 = vadd.f32 %v3413_v11, %v4507_v62  ;;  %v4509_v17 = vld [vmem:[#allocation113_spill] sm:$0xff]  ;;  %v1030_v49 = vadd.f32 %v3413_v11, %v4510_v26  ;;  %v4514_v60 = vld [vmem:[#allocation118_spill] sm:$0xff] }
 0x132   :  { %1336 = vst [vmem:[#allocation12 + $0x260] sm:$0xff] %v1012_v0  ;;  %1337 = vst [vmem:[#allocation12 + $0x268] sm:$0xff] %v1013_v55  ;;  %v1029_v21 = vadd.f32 %v3413_v11, %v4509_v17  ;;  %v1031_v0 = vadd.f32 %v3413_v11, %v4511_v22  ;;  %v1032_v55 = vadd.f32 %v3413_v11, %v4512_v1  ;;  %v4515_v23 = vld [vmem:[#allocation119_spill] sm:$0xff]  ;;  %v4516_v28 = vld [vmem:[#allocation120_spill] sm:$0xff] }
 0x133   :  { %1338 = vst [vmem:[#allocation12 + $0x270] sm:$0xff] %v1014_v2  ;;  %1339 = vst [vmem:[#allocation12 + $0x278] sm:$0xff] %v1015_v9  ;;  %v1033_v2 = vadd.f32 %v3413_v11, %v4513_v63  ;;  %v1034_v9 = vadd.f32 %v3413_v11, %v4514_v60  ;;  %v4517_v10 = vld [vmem:[#allocation121_spill] sm:$0xff]  ;;  %v4518_v5 = vld [vmem:[#allocation122_spill] sm:$0xff] }
 0x134   :  { %1340 = vst [vmem:[#allocation12 + $0x280] sm:$0xff] %v1016_v29  ;;  %1341 = vst [vmem:[#allocation12 + $0x288] sm:$0xff] %v1017_v56  ;;  %v1035_v29 = vadd.f32 %v3413_v11, %v4515_v23  ;;  %v1036_v56 = vadd.f32 %v3413_v11, %v4516_v28  ;;  %v4519_v13 = vld [vmem:[#allocation123_spill] sm:$0xff]  ;;  %v4521_v7 = vld [vmem:[#allocation125_spill] sm:$0xff] }
 0x135   :  { %1342 = vst [vmem:[#allocation12 + $0x290] sm:$0xff] %v1018_v19  ;;  %1343 = vst [vmem:[#allocation12 + $0x298] sm:$0xff] %v1019_v12  ;;  %v1037_v19 = vadd.f32 %v3413_v11, %v4517_v10  ;;  %v1038_v12 = vadd.f32 %v3413_v11, %v4518_v5  ;;  %v4522_v16 = vld [vmem:[#allocation126_spill] sm:$0xff]  ;;  %v4523_v30 = vld [vmem:[#allocation127_spill] sm:$0xff]  ;;  %v1059_v5 = vadd.f32 %v3413_v11, %v2608_v34 }
 0x136   :  { %1344 = vst [vmem:[#allocation12 + $0x2a0] sm:$0xff] %v1020_v8  ;;  %1345 = vst [vmem:[#allocation12 + $0x2a8] sm:$0xff] %v1021_v50  ;;  %v1039_v8 = vadd.f32 %v3413_v11, %v4519_v13  ;;  %v1041_v50 = vadd.f32 %v3413_v11, %v2536_v31  ;;  %v1046_v62 = vadd.f32 %v3413_v11, %v4523_v30  ;;  %v4524_v31 = vld [vmem:[#allocation128_spill] sm:$0xff]  ;;  %v4535_v13 = vld [vmem:[#allocation139_spill] sm:$0xff] }
 0x137   :  { %1346 = vst [vmem:[#allocation12 + $0x2b0] sm:$0xff] %v1022_v61  ;;  %1347 = vst [vmem:[#allocation12 + $0x2b8] sm:$0xff] %v1023_v14  ;;  %v1042_v61 = vadd.f32 %v3413_v11, %v2540_v32  ;;  %v4520_v14 = vld [vmem:[#allocation124_spill] sm:$0xff]  ;;  %v4525_v32 = vld [vmem:[#allocation129_spill] sm:$0xff] }
 0x138   :  { %1348 = vst [vmem:[#allocation12 + $0x2c0] sm:$0xff] %v1024_v6  ;;  %1349 = vst [vmem:[#allocation12 + $0x2c8] sm:$0xff] %v1025_v15  ;;  %v1043_v6 = vadd.f32 %v3413_v11, %v4520_v14  ;;  %v1044_v15 = vadd.f32 %v3413_v11, %v4521_v7  ;;  %v1048_v24 = vadd.f32 %v3413_v11, %v4525_v32  ;;  %v4542_v30 = vld [vmem:[#allocation146_spill] sm:$0xff]  ;;  %v4544_v32 = vld [vmem:[#allocation148_spill] sm:$0xff] }
 0x139   :  { %1350 = vst [vmem:[#allocation12 + $0x2d0] sm:$0xff] %v1026_v4  ;;  %1351 = vst [vmem:[#allocation12 + $0x2d8] sm:$0xff] %v1027_v18  ;;  %v1045_v4 = vadd.f32 %v3413_v11, %v4522_v16  ;;  %v1047_v18 = vadd.f32 %v3413_v11, %v4524_v31  ;;  %v4541_v16 = vld [vmem:[#allocation145_spill] sm:$0xff]  ;;  %v4543_v31 = vld [vmem:[#allocation147_spill] sm:$0xff] }
 0x13a   :  { %1352 = vst [vmem:[#allocation12 + $0x2e0] sm:$0xff] %v1028_v25  ;;  %1353 = vst [vmem:[#allocation12 + $0x2e8] sm:$0xff] %v1029_v21  ;;  %v4526_v25 = vld [vmem:[#allocation130_spill] sm:$0xff]  ;;  %v4527_v21 = vld [vmem:[#allocation131_spill] sm:$0xff] }
 0x13b   :  { %1354 = vst [vmem:[#allocation12 + $0x2f0] sm:$0xff] %v1030_v49  ;;  %1355 = vst [vmem:[#allocation12 + $0x2f8] sm:$0xff] %v1031_v0  ;;  %v1049_v17 = vadd.f32 %v3413_v11, %v4526_v25  ;;  %v1050_v26 = vadd.f32 %v3413_v11, %v4527_v21  ;;  %v4528_v49 = vld [vmem:[#allocation132_spill] sm:$0xff]  ;;  %v4529_v0 = vld [vmem:[#allocation133_spill] sm:$0xff]  ;;  %v135_v21 = vpop.xlane.xlu0 %134 }
 0x13c   :  { %1356 = vst [vmem:[#allocation12 + $0x300] sm:$0xff] %v1032_v55  ;;  %1357 = vst [vmem:[#allocation12 + $0x308] sm:$0xff] %v1033_v2  ;;  %v1051_v22 = vadd.f32 %v3413_v11, %v4528_v49  ;;  %v1052_v1 = vadd.f32 %v3413_v11, %v4529_v0  ;;  %v4530_v55 = vld [vmem:[#allocation134_spill] sm:$0xff]  ;;  %v4531_v2 = vld [vmem:[#allocation135_spill] sm:$0xff] }
 0x13d   :  { %1358 = vst [vmem:[#allocation12 + $0x310] sm:$0xff] %v1034_v9  ;;  %1359 = vst [vmem:[#allocation12 + $0x318] sm:$0xff] %v1035_v29  ;;  %v1053_v63 = vadd.f32 %v3413_v11, %v4530_v55  ;;  %v1054_v60 = vadd.f32 %v3413_v11, %v4531_v2  ;;  %v4532_v9 = vld [vmem:[#allocation136_spill] sm:$0xff]  ;;  %v4533_v29 = vld [vmem:[#allocation137_spill] sm:$0xff] }
 0x13e   :  { %1360 = vst [vmem:[#allocation12 + $0x320] sm:$0xff] %v1036_v56  ;;  %1361 = vst [vmem:[#allocation12 + $0x328] sm:$0xff] %v1037_v19  ;;  %v1055_v23 = vadd.f32 %v3413_v11, %v4532_v9  ;;  %v1056_v28 = vadd.f32 %v3413_v11, %v4533_v29  ;;  %v4534_v56 = vld [vmem:[#allocation138_spill] sm:$0xff]  ;;  %v1058_v19 = vadd.f32 %v3413_v11, %v2604_v33  ;;  %v4545_v25 = vld [vmem:[#allocation149_spill] sm:$0xff] }
 0x13f   :  { %1362 = vst [vmem:[#allocation12 + $0x330] sm:$0xff] %v1038_v12  ;;  %1363 = vst [vmem:[#allocation12 + $0x338] sm:$0xff] %v1039_v8  ;;  %v1057_v10 = vadd.f32 %v3413_v11, %v4534_v56  ;;  %v1060_v12 = vadd.f32 %v3413_v11, %v2612_v35  ;;  %v1061_v8 = vadd.f32 %v3413_v11, %v4535_v13  ;;  %v4538_v33 = vld [vmem:[#allocation142_spill] sm:$0xff]  ;;  %v4540_v35 = vld [vmem:[#allocation144_spill] sm:$0xff] }
 0x140   :  { %1364 = vst [vmem:[#allocation12 + $0x340] sm:$0xff] %v1040_v59  ;;  %1365 = vst [vmem:[#allocation12 + $0x348] sm:$0xff] %v1041_v50  ;;  %v4536_v59 = vld [vmem:[#allocation140_spill] sm:$0xff]  ;;  %v1064_v34 = vadd.f32 %v3413_v11, %v4538_v33  ;;  %v1077_v29 = vadd.f32 %v3413_v11, %v2680_v37  ;;  %v4551_v56 = vld [vmem:[#allocation154_spill] sm:$0xff] }
 0x141   :  { %1366 = vst [vmem:[#allocation12 + $0x350] sm:$0xff] %v1042_v61  ;;  %1367 = vst [vmem:[#allocation12 + $0x358] sm:$0xff] %v1043_v6  ;;  %v1062_v50 = vadd.f32 %v3413_v11, %v4536_v59  ;;  %v4537_v61 = vld [vmem:[#allocation141_spill] sm:$0xff]  ;;  %v4539_v6 = vld [vmem:[#allocation143_spill] sm:$0xff] }
 0x142   :  { %1368 = vst [vmem:[#allocation12 + $0x360] sm:$0xff] %v1044_v15  ;;  %1369 = vst [vmem:[#allocation12 + $0x368] sm:$0xff] %v1045_v4  ;;  %v1063_v14 = vadd.f32 %v3413_v11, %v4537_v61  ;;  %v1065_v7 = vadd.f32 %v3413_v11, %v4539_v6  ;;  %v1066_v15 = vadd.f32 %v3413_v11, %v4540_v35  ;;  %v4554_v13 = vld [vmem:[#allocation157_spill] sm:$0xff]  ;;  %v4556_v59 = vld [vmem:[#allocation159_spill] sm:$0xff] }
 0x143   :  { %1370 = vst [vmem:[#allocation12 + $0x370] sm:$0xff] %v1046_v62  ;;  %1371 = vst [vmem:[#allocation12 + $0x378] sm:$0xff] %v1047_v18  ;;  %v1067_v4 = vadd.f32 %v3413_v11, %v4541_v16  ;;  %v1068_v62 = vadd.f32 %v3413_v11, %v4542_v30  ;;  %v1069_v18 = vadd.f32 %v3413_v11, %v4543_v31  ;;  %v4557_v61 = vld [vmem:[#allocation160_spill] sm:$0xff]  ;;  %v4558_v33 = vld [vmem:[#allocation161_spill] sm:$0xff] }
 0x144   :  { %1372 = vst [vmem:[#allocation12 + $0x380] sm:$0xff] %v1048_v24  ;;  %1373 = vst [vmem:[#allocation12 + $0x388] sm:$0xff] %v1049_v17  ;;  %v1070_v24 = vadd.f32 %v3413_v11, %v4544_v32  ;;  %v1071_v17 = vadd.f32 %v3413_v11, %v4545_v25  ;;  %v1082_v37 = vadd.f32 %v3413_v11, %v4554_v13  ;;  %v4559_v6 = vld [vmem:[#allocation162_spill] sm:$0xff]  ;;  %v4560_v35 = vld [vmem:[#allocation163_spill] sm:$0xff] }
 0x145   :  { %1374 = vst [vmem:[#allocation12 + $0x390] sm:$0xff] %v1050_v26  ;;  %1375 = vst [vmem:[#allocation12 + $0x398] sm:$0xff] %v1051_v22  ;;  %v4546_v26 = vld [vmem:[#allocation150_spill] sm:$0xff]  ;;  %v4547_v22 = vld [vmem:[#allocation151_spill] sm:$0xff] }
 0x146   :  { %1376 = vst [vmem:[#allocation12 + $0x3a0] sm:$0xff] %v1052_v1  ;;  %1377 = vst [vmem:[#allocation12 + $0x3a8] sm:$0xff] %v1053_v63  ;;  %v1072_v49 = vadd.f32 %v3413_v11, %v4546_v26  ;;  %v1073_v0 = vadd.f32 %v3413_v11, %v4547_v22  ;;  %v4548_v1 = vld [vmem:[#allocation152_spill] sm:$0xff]  ;;  %v4549_v63 = vld [vmem:[#allocation153_spill] sm:$0xff] }
 0x147   :  { %1378 = vst [vmem:[#allocation12 + $0x3b0] sm:$0xff] %v1054_v60  ;;  %1379 = vst [vmem:[#allocation12 + $0x3b8] sm:$0xff] %v1055_v23  ;;  %v1074_v55 = vadd.f32 %v3413_v11, %v4548_v1  ;;  %v1075_v2 = vadd.f32 %v3413_v11, %v4549_v63  ;;  %v4550_v60 = vstv %s1976_s4  ;;  %v1076_v23 = vadd.f32 %v3413_v11, %v2676_v36  ;;  %v4561_v16 = vld [vmem:[#allocation164_spill] sm:$0xff]  ;;  %v4562_v30 = vld [vmem:[#allocation165_spill] sm:$0xff] }
 0x148   :  { %1380 = vst [vmem:[#allocation12 + $0x3c0] sm:$0xff] %v1056_v28  ;;  %1381 = vst [vmem:[#allocation12 + $0x3c8] sm:$0xff] %v1057_v10  ;;  %v137_v9 = vadd.f32 %v4550_v60, %v135_v21  ;;  %v1078_v28 = vadd.f32 %v3413_v11, %v2684_v38  ;;  %v1079_v10 = vadd.f32 %v3413_v11, %v4551_v56  ;;  %v4555_v38 = vld [vmem:[#allocation158_spill] sm:$0xff] }
 0x149   :  { %1382 = vst [vmem:[#allocation12 + $0x3d0] sm:$0xff] %v1058_v19  ;;  %1383 = vst [vmem:[#allocation12 + $0x3d8] sm:$0xff] %v1059_v5  ;;  %v4552_v19 = vld [vmem:[#allocation155_spill] sm:$0xff] }
 0x14a   :  { %1384 = vst [vmem:[#allocation12 + $0x3e0] sm:$0xff] %v1060_v12  ;;  %1385 = vst [vmem:[#allocation12 + $0x3e8] sm:$0xff] %v1061_v8  ;;  %v1080_v5 = vadd.f32 %v3413_v11, %v4552_v19  ;;  %v4553_v12 = vld [vmem:[#allocation156_spill] sm:$0xff]  ;;  %v1083_v8 = vadd.f32 %v3413_v11, %v4555_v38 }
 0x14b   :  { %1386 = vst [vmem:[#allocation12 + $0x3f0] sm:$0xff] %v1062_v50  ;;  %1387 = vst [vmem:[#allocation12 + $0x3f8] sm:$0xff] %v1063_v14  ;;  %v1081_v36 = vadd.f32 %v3413_v11, %v4553_v12  ;;  %v1084_v50 = vadd.f32 %v3413_v11, %v4556_v59  ;;  %v1085_v14 = vadd.f32 %v3413_v11, %v4557_v61 }
 0x14c   :  { %1388 = vst [vmem:[#allocation12 + $0x400] sm:$0xff] %v1064_v34  ;;  %1389 = vst [vmem:[#allocation12 + $0x408] sm:$0xff] %v1065_v7  ;;  %v1086_v34 = vadd.f32 %v3413_v11, %v4558_v33  ;;  %v1087_v7 = vadd.f32 %v3413_v11, %v4559_v6 }
 0x14d   :  { %1390 = vst [vmem:[#allocation12 + $0x410] sm:$0xff] %v1066_v15  ;;  %1391 = vst [vmem:[#allocation12 + $0x418] sm:$0xff] %v1067_v4  ;;  %v1088_v15 = vadd.f32 %v3413_v11, %v4560_v35  ;;  %v1089_v4 = vadd.f32 %v3413_v11, %v4561_v16 }
 0x14e   :  { %1392 = vst [vmem:[#allocation12 + $0x420] sm:$0xff] %v1068_v62  ;;  %1393 = vst [vmem:[#allocation12 + $0x428] sm:$0xff] %v1069_v18  ;;  %v1090_v62 = vadd.f32 %v3413_v11, %v4562_v30 }
 0x14f   :  { %1394 = vst [vmem:[#allocation12 + $0x430] sm:$0xff] %v1070_v24  ;;  %1395 = vst [vmem:[#allocation12 + $0x438] sm:$0xff] %v1071_v17 }
 0x150   :  { %1396 = vst [vmem:[#allocation12 + $0x440] sm:$0xff] %v1072_v49  ;;  %1397 = vst [vmem:[#allocation12 + $0x448] sm:$0xff] %v1073_v0 }
 0x151   :  { %1398 = vst [vmem:[#allocation12 + $0x450] sm:$0xff] %v1074_v55  ;;  %1399 = vst [vmem:[#allocation12 + $0x458] sm:$0xff] %v1075_v2 }
 0x152   :  { %139 = vst.msk [vmem:[#allocation13] sm:$0x1] %vm138_vm1, %v137_v9  ;;  %1400 = vst [vmem:[#allocation12 + $0x460] sm:$0xff] %v1076_v23 }
 0x153   :  { %1401 = vst [vmem:[#allocation12 + $0x468] sm:$0xff] %v1077_v29  ;;  %1402 = vst [vmem:[#allocation12 + $0x470] sm:$0xff] %v1078_v28 }
 0x154   :  { %1403 = vst [vmem:[#allocation12 + $0x478] sm:$0xff] %v1079_v10  ;;  %1404 = vst [vmem:[#allocation12 + $0x480] sm:$0xff] %v1080_v5 }
 0x155   :  { %1405 = vst [vmem:[#allocation12 + $0x488] sm:$0xff] %v1081_v36  ;;  %1406 = vst [vmem:[#allocation12 + $0x490] sm:$0xff] %v1082_v37 }
 0x156   :  { %1748 = shalt.err (!%p1745_p11)
}
 0x157   :  { %s1749_s11 = scalar_lea.hbm %s4107_s6, 16 }
 0x158   :  { %p1750_p12 = scmp.ne.s32.totalorder %s4107_s6, %s1749_s11  ;;  %p1753_p13 = scmp.lt.u32.totalorder %s1749_s11, %s4107_s6 }
 0x15a   :  { %p1755_p0 = pnand %p1753_p13, %p1750_p12 }
 0x15c   :  { %1758 = shalt.err (!%p1755_p0)
}
 0x15d   :  { %1605 = dma.vmem_to_hbm [thread:$0]  %s3703_s30, 16, %s4107_s6, [#allocation14]   ;;  %v4563_v31 = vld [vmem:[#allocation166_spill] sm:$0xff]  ;;  %v4564_v32 = vld [vmem:[#allocation167_spill] sm:$0xff]  ;;  %v4565_v25 = vld [vmem:[#allocation168_spill] sm:$0xff]  ;;  %v1094_v21 = vadd.f32 %v3413_v11, %v2748_v39  ;;  %1407 = vst [vmem:[#allocation12 + $0x498] sm:$0xff] %v1083_v8  ;;  %v1095_v26 = vadd.f32 %v3413_v11, %v2752_v40  ;;  %v1096_v49 = vadd.f32 %v3413_v11, %v2756_v41  ;;  %v1112_v6 = vadd.f32 %v3413_v11, %v2820_v42 }
 0x15e   :  { %v1091_v18 = vadd.f32 %v3413_v11, %v4563_v31  ;;  %v1092_v24 = vadd.f32 %v3413_v11, %v4564_v32  ;;  %v1093_v17 = vadd.f32 %v3413_v11, %v4565_v25  ;;  %1408 = vst [vmem:[#allocation12 + $0x4a0] sm:$0xff] %v1084_v50  ;;  %1409 = vst [vmem:[#allocation12 + $0x4a8] sm:$0xff] %v1085_v14  ;;  %v4566_v22 = vld [vmem:[#allocation169_spill] sm:$0xff]  ;;  %v4567_v1 = vld [vmem:[#allocation170_spill] sm:$0xff]  ;;  %s1802_s6 = smov [#allocation12]  }
 0x15f   :  { %1410 = vst [vmem:[#allocation12 + $0x4b0] sm:$0xff] %v1086_v34  ;;  %v1097_v0 = vadd.f32 %v3413_v11, %v4566_v22  ;;  %v1098_v55 = vadd.f32 %v3413_v11, %v4567_v1  ;;  %1411 = vst [vmem:[#allocation12 + $0x4b8] sm:$0xff] %v1087_v7  ;;  %v4568_v39 = vld [vmem:[#allocation171_spill] sm:$0xff]  ;;  %v4569_v2 = vld [vmem:[#allocation172_spill] sm:$0xff]  ;;  %v1113_v7 = vadd.f32 %v3413_v11, %v2824_v43  ;;  %s1589_s18 = sshll.u32 %s1802_s6, 4  ;;  %s1590_s18 = int_to_ptr.vmem [resolvable:$true] %s1589_s18 }
 0x160   :  { %1412 = vst [vmem:[#allocation12 + $0x4c0] sm:$0xff] %v1088_v15  ;;  %1413 = vst [vmem:[#allocation12 + $0x4c8] sm:$0xff] %v1089_v4  ;;  %v1099_v63 = vadd.f32 %v3413_v11, %v4568_v39  ;;  %v1100_v60 = vadd.f32 %v3413_v11, %v4569_v2  ;;  %v4570_v40 = vld [vmem:[#allocation173_spill] sm:$0xff]  ;;  %v4571_v41 = vld [vmem:[#allocation174_spill] sm:$0xff]  ;;  %v1114_v35 = vadd.f32 %v3413_v11, %v2828_v44  ;;  %s1759_s19 = scalar_lea.vmem %s1590_s18, 41472  ;;  %p1764_p2 = scmp.lt.s32.totalorder %s1590_s18, %s1590_s18 }
 0x161   :  { %1414 = vst [vmem:[#allocation12 + $0x4d0] sm:$0xff] %v1090_v62  ;;  %v1101_v9 = vadd.f32 %v3413_v11, %v4570_v40  ;;  %v1102_v23 = vadd.f32 %v3413_v11, %v4571_v41  ;;  %1415 = vst [vmem:[#allocation12 + $0x4d8] sm:$0xff] %v1091_v18  ;;  %v4572_v29 = vld [vmem:[#allocation175_spill] sm:$0xff]  ;;  %v4573_v56 = vld [vmem:[#allocation176_spill] sm:$0xff]  ;;  %p1760_p1 = scmp.ne.s32.totalorder %s1590_s18, %s1759_s19  ;;  %p1765_p3 = scmp.lt.s32.totalorder %s1759_s19, %s1759_s19 }
 0x162   :  { %1416 = vst [vmem:[#allocation12 + $0x4e0] sm:$0xff] %v1092_v24  ;;  %1417 = vst [vmem:[#allocation12 + $0x4e8] sm:$0xff] %v1093_v17  ;;  %v1103_v28 = vadd.f32 %v3413_v11, %v4572_v29  ;;  %v1104_v10 = vadd.f32 %v3413_v11, %v4573_v56  ;;  %v4574_v19 = vld [vmem:[#allocation177_spill] sm:$0xff]  ;;  %v4575_v12 = vld [vmem:[#allocation178_spill] sm:$0xff]  ;;  %v1131_v56 = vadd.f32 %v3413_v11, %v2896_v46 }
 0x163   :  { %1418 = vst [vmem:[#allocation12 + $0x4f0] sm:$0xff] %v1094_v21  ;;  %v1105_v5 = vadd.f32 %v3413_v11, %v4574_v19  ;;  %v1106_v36 = vadd.f32 %v3413_v11, %v4575_v12  ;;  %1419 = vst [vmem:[#allocation12 + $0x4f8] sm:$0xff] %v1095_v26  ;;  %v4576_v13 = vld [vmem:[#allocation179_spill] sm:$0xff]  ;;  %v4577_v38 = vld [vmem:[#allocation180_spill] sm:$0xff]  ;;  %p1766_p4 = por %p1765_p3, %p1764_p2 }
 0x164   :  { %1420 = vst [vmem:[#allocation12 + $0x500] sm:$0xff] %v1096_v49  ;;  %1421 = vst [vmem:[#allocation12 + $0x508] sm:$0xff] %v1097_v0  ;;  %v1107_v37 = vadd.f32 %v3413_v11, %v4576_v13  ;;  %v1108_v8 = vadd.f32 %v3413_v11, %v4577_v38  ;;  %v4578_v59 = vld [vmem:[#allocation181_spill] sm:$0xff]  ;;  %v4579_v61 = vld [vmem:[#allocation182_spill] sm:$0xff] }
 0x165   :  { %1422 = vst [vmem:[#allocation12 + $0x510] sm:$0xff] %v1098_v55  ;;  %v1109_v50 = vadd.f32 %v3413_v11, %v4578_v59  ;;  %v1110_v14 = vadd.f32 %v3413_v11, %v4579_v61  ;;  %1423 = vst [vmem:[#allocation12 + $0x518] sm:$0xff] %v1099_v63  ;;  %v4580_v33 = vld [vmem:[#allocation183_spill] sm:$0xff]  ;;  %v4581_v15 = vld [vmem:[#allocation184_spill] sm:$0xff]  ;;  %p1767_p5 = pnand %p1766_p4, %p1760_p1 }
 0x166   :  { %1424 = vst [vmem:[#allocation12 + $0x520] sm:$0xff] %v1100_v60  ;;  %1425 = vst [vmem:[#allocation12 + $0x528] sm:$0xff] %v1101_v9  ;;  %v1111_v34 = vadd.f32 %v3413_v11, %v4580_v33  ;;  %v1115_v16 = vadd.f32 %v3413_v11, %v4581_v15  ;;  %v4582_v4 = vld [vmem:[#allocation185_spill] sm:$0xff]  ;;  %v4583_v62 = vld [vmem:[#allocation186_spill] sm:$0xff] }
 0x167   :  { %1426 = vst [vmem:[#allocation12 + $0x530] sm:$0xff] %v1102_v23  ;;  %1427 = vst [vmem:[#allocation12 + $0x538] sm:$0xff] %v1103_v28  ;;  %v1116_v30 = vadd.f32 %v3413_v11, %v4582_v4  ;;  %v1117_v31 = vadd.f32 %v3413_v11, %v4583_v62  ;;  %v4584_v42 = vld [vmem:[#allocation187_spill] sm:$0xff]  ;;  %v4585_v43 = vld [vmem:[#allocation188_spill] sm:$0xff]  ;;  %v1130_v28 = vadd.f32 %v3413_v11, %v2892_v45 }
 0x168   :  { %1428 = vst [vmem:[#allocation12 + $0x540] sm:$0xff] %v1104_v10  ;;  %1429 = vst [vmem:[#allocation12 + $0x548] sm:$0xff] %v1105_v5  ;;  %v1118_v18 = vadd.f32 %v3413_v11, %v4584_v42  ;;  %v1119_v44 = vadd.f32 %v3413_v11, %v4585_v43  ;;  %v4586_v32 = vld [vmem:[#allocation189_spill] sm:$0xff]  ;;  %v4587_v25 = vld [vmem:[#allocation190_spill] sm:$0xff]  ;;  %v1132_v10 = vadd.f32 %v3413_v11, %v2900_v47 }
 0x169   :  { %1430 = vst [vmem:[#allocation12 + $0x550] sm:$0xff] %v1106_v36  ;;  %1431 = vst [vmem:[#allocation12 + $0x558] sm:$0xff] %v1107_v37  ;;  %v1120_v24 = vadd.f32 %v3413_v11, %v4586_v32  ;;  %v1121_v17 = vadd.f32 %v3413_v11, %v4587_v25  ;;  %v4588_v21 = vld [vmem:[#allocation191_spill] sm:$0xff]  ;;  %v4589_v49 = vld [vmem:[#allocation192_spill] sm:$0xff]  ;;  %v1148_v32 = vadd.f32 %v3413_v11, %v2964_v48 }
 0x16a   :  { %1432 = vst [vmem:[#allocation12 + $0x560] sm:$0xff] %v1108_v8  ;;  %1433 = vst [vmem:[#allocation12 + $0x568] sm:$0xff] %v1109_v50  ;;  %v1122_v26 = vadd.f32 %v3413_v11, %v4588_v21  ;;  %v1123_v22 = vadd.f32 %v3413_v11, %v4589_v49  ;;  %v4590_v0 = vld [vmem:[#allocation193_spill] sm:$0xff]  ;;  %v4591_v55 = vld [vmem:[#allocation194_spill] sm:$0xff] }
 0x16b   :  { %1434 = vst [vmem:[#allocation12 + $0x570] sm:$0xff] %v1110_v14  ;;  %1435 = vst [vmem:[#allocation12 + $0x578] sm:$0xff] %v1111_v34  ;;  %v1124_v1 = vadd.f32 %v3413_v11, %v4590_v0  ;;  %v1125_v39 = vadd.f32 %v3413_v11, %v4591_v55  ;;  %v4592_v63 = vld [vmem:[#allocation195_spill] sm:$0xff]  ;;  %v4593_v60 = vld [vmem:[#allocation196_spill] sm:$0xff] }
 0x16c   :  { %1436 = vst [vmem:[#allocation12 + $0x580] sm:$0xff] %v1112_v6  ;;  %1437 = vst [vmem:[#allocation12 + $0x588] sm:$0xff] %v1113_v7  ;;  %v1126_v2 = vadd.f32 %v3413_v11, %v4592_v63  ;;  %v1127_v40 = vadd.f32 %v3413_v11, %v4593_v60  ;;  %v4594_v9 = vld [vmem:[#allocation197_spill] sm:$0xff]  ;;  %v4595_v23 = vld [vmem:[#allocation198_spill] sm:$0xff] }
 0x16d   :  { %1438 = vst [vmem:[#allocation12 + $0x590] sm:$0xff] %v1114_v35  ;;  %1439 = vst [vmem:[#allocation12 + $0x598] sm:$0xff] %v1115_v16  ;;  %v1128_v41 = vadd.f32 %v3413_v11, %v4594_v9  ;;  %v1129_v29 = vadd.f32 %v3413_v11, %v4595_v23  ;;  %v4596_v19 = vld [vmem:[#allocation199_spill] sm:$0xff]  ;;  %v4597_v12 = vld [vmem:[#allocation200_spill] sm:$0xff] }
 0x16e   :  { %1440 = vst [vmem:[#allocation12 + $0x5a0] sm:$0xff] %v1116_v30  ;;  %1441 = vst [vmem:[#allocation12 + $0x5a8] sm:$0xff] %v1117_v31  ;;  %v1133_v5 = vadd.f32 %v3413_v11, %v4596_v19  ;;  %v1134_v36 = vadd.f32 %v3413_v11, %v4597_v12  ;;  %v4598_v45 = vld [vmem:[#allocation201_spill] sm:$0xff]  ;;  %v4599_v37 = vld [vmem:[#allocation202_spill] sm:$0xff] }
 0x16f   :  { %1442 = vst [vmem:[#allocation12 + $0x5b0] sm:$0xff] %v1118_v18  ;;  %1443 = vst [vmem:[#allocation12 + $0x5b8] sm:$0xff] %v1119_v44  ;;  %v1135_v13 = vadd.f32 %v3413_v11, %v4598_v45  ;;  %v1136_v38 = vadd.f32 %v3413_v11, %v4599_v37  ;;  %v4600_v46 = vld [vmem:[#allocation203_spill] sm:$0xff]  ;;  %v4601_v47 = vld [vmem:[#allocation204_spill] sm:$0xff] }
 0x170   :  { %1444 = vst [vmem:[#allocation12 + $0x5c0] sm:$0xff] %v1120_v24  ;;  %1445 = vst [vmem:[#allocation12 + $0x5c8] sm:$0xff] %v1121_v17  ;;  %v1137_v8 = vadd.f32 %v3413_v11, %v4600_v46  ;;  %v1138_v59 = vadd.f32 %v3413_v11, %v4601_v47  ;;  %v4602_v50 = vld [vmem:[#allocation205_spill] sm:$0xff]  ;;  %v4603_v14 = vld [vmem:[#allocation206_spill] sm:$0xff] }
 0x171   :  { %1446 = vst [vmem:[#allocation12 + $0x5d0] sm:$0xff] %v1122_v26  ;;  %1447 = vst [vmem:[#allocation12 + $0x5d8] sm:$0xff] %v1123_v22  ;;  %v1139_v61 = vadd.f32 %v3413_v11, %v4602_v50  ;;  %v1140_v33 = vadd.f32 %v3413_v11, %v4603_v14  ;;  %v4604_v34 = vld [vmem:[#allocation207_spill] sm:$0xff]  ;;  %v4605_v7 = vld [vmem:[#allocation208_spill] sm:$0xff] }
 0x172   :  { %1448 = vst [vmem:[#allocation12 + $0x5e0] sm:$0xff] %v1124_v1  ;;  %1449 = vst [vmem:[#allocation12 + $0x5e8] sm:$0xff] %v1125_v39  ;;  %v1141_v6 = vadd.f32 %v3413_v11, %v4604_v34  ;;  %v1142_v35 = vadd.f32 %v3413_v11, %v4605_v7  ;;  %v4606_v15 = vld [vmem:[#allocation209_spill] sm:$0xff]  ;;  %v4607_v4 = vld [vmem:[#allocation210_spill] sm:$0xff] }
 0x173   :  { %1450 = vst [vmem:[#allocation12 + $0x5f0] sm:$0xff] %v1126_v2  ;;  %1451 = vst [vmem:[#allocation12 + $0x5f8] sm:$0xff] %v1127_v40  ;;  %v1143_v16 = vadd.f32 %v3413_v11, %v4606_v15  ;;  %v1144_v30 = vadd.f32 %v3413_v11, %v4607_v4  ;;  %v4608_v62 = vld [vmem:[#allocation211_spill] sm:$0xff]  ;;  %v4609_v42 = vld [vmem:[#allocation212_spill] sm:$0xff] }
 0x174   :  { %1452 = vst [vmem:[#allocation12 + $0x600] sm:$0xff] %v1128_v41  ;;  %1453 = vst [vmem:[#allocation12 + $0x608] sm:$0xff] %v1129_v29  ;;  %v1145_v31 = vadd.f32 %v3413_v11, %v4608_v62  ;;  %v1146_v18 = vadd.f32 %v3413_v11, %v4609_v42  ;;  %v4610_v43 = vld [vmem:[#allocation213_spill] sm:$0xff]  ;;  %v4611_v24 = vld [vmem:[#allocation214_spill] sm:$0xff] }
 0x175   :  { %1454 = vst [vmem:[#allocation12 + $0x610] sm:$0xff] %v1130_v28  ;;  %1455 = vst [vmem:[#allocation12 + $0x618] sm:$0xff] %v1131_v56  ;;  %v1147_v44 = vadd.f32 %v3413_v11, %v4610_v43  ;;  %v1149_v25 = vadd.f32 %v3413_v11, %v4611_v24  ;;  %v4612_v17 = vld [vmem:[#allocation215_spill] sm:$0xff]  ;;  %v4613_v26 = vld [vmem:[#allocation216_spill] sm:$0xff] }
 0x176   :  { %1456 = vst [vmem:[#allocation12 + $0x620] sm:$0xff] %v1132_v10  ;;  %1457 = vst [vmem:[#allocation12 + $0x628] sm:$0xff] %v1133_v5  ;;  %v1150_v21 = vadd.f32 %v3413_v11, %v4612_v17  ;;  %v1151_v49 = vadd.f32 %v3413_v11, %v4613_v26  ;;  %v4614_v22 = vld [vmem:[#allocation217_spill] sm:$0xff]  ;;  %v4615_v1 = vld [vmem:[#allocation218_spill] sm:$0xff] }
 0x177   :  { %1458 = vst [vmem:[#allocation12 + $0x630] sm:$0xff] %v1134_v36  ;;  %1459 = vst [vmem:[#allocation12 + $0x638] sm:$0xff] %v1135_v13  ;;  %v1152_v0 = vadd.f32 %v3413_v11, %v4614_v22  ;;  %v1153_v55 = vadd.f32 %v3413_v11, %v4615_v1  ;;  %v4616_v48 = vld [vmem:[#allocation219_spill] sm:$0xff]  ;;  %v4617_v63 = vld [vmem:[#allocation220_spill] sm:$0xff] }
 0x178   :  { %1460 = vst [vmem:[#allocation12 + $0x640] sm:$0xff] %v1136_v38  ;;  %1461 = vst [vmem:[#allocation12 + $0x648] sm:$0xff] %v1137_v8  ;;  %v1154_v39 = vadd.f32 %v3413_v11, %v4616_v48  ;;  %v1155_v2 = vadd.f32 %v3413_v11, %v4617_v63  ;;  %v4618_v60 = vld [vmem:[#allocation221_spill] sm:$0xff]  ;;  %v4619_v9 = vld [vmem:[#allocation222_spill] sm:$0xff] }
 0x179   :  { %1462 = vst [vmem:[#allocation12 + $0x650] sm:$0xff] %v1138_v59  ;;  %1463 = vst [vmem:[#allocation12 + $0x658] sm:$0xff] %v1139_v61  ;;  %v1156_v40 = vadd.f32 %v3413_v11, %v4618_v60  ;;  %v1157_v41 = vadd.f32 %v3413_v11, %v4619_v9  ;;  %v4620_v23 = vld [vmem:[#allocation223_spill] sm:$0xff]  ;;  %v4621_v28 = vld [vmem:[#allocation224_spill] sm:$0xff] }
 0x17a   :  { %1464 = vst [vmem:[#allocation12 + $0x660] sm:$0xff] %v1140_v33  ;;  %1465 = vst [vmem:[#allocation12 + $0x668] sm:$0xff] %v1141_v6  ;;  %v1158_v29 = vadd.f32 %v3413_v11, %v4620_v23  ;;  %v1159_v56 = vadd.f32 %v3413_v11, %v4621_v28  ;;  %v4622_v10 = vld [vmem:[#allocation225_spill] sm:$0xff]  ;;  %v4623_v5 = vld [vmem:[#allocation226_spill] sm:$0xff] }
 0x17b   :  { %1466 = vst [vmem:[#allocation12 + $0x670] sm:$0xff] %v1142_v35  ;;  %1467 = vst [vmem:[#allocation12 + $0x678] sm:$0xff] %v1143_v16  ;;  %v1160_v19 = vadd.f32 %v3413_v11, %v4622_v10  ;;  %v1161_v12 = vadd.f32 %v3413_v11, %v4623_v5  ;;  %v4624_v36 = vld [vmem:[#allocation227_spill] sm:$0xff]  ;;  %v4625_v13 = vld [vmem:[#allocation228_spill] sm:$0xff] }
 0x17c   :  { %1468 = vst [vmem:[#allocation12 + $0x680] sm:$0xff] %v1144_v30  ;;  %1469 = vst [vmem:[#allocation12 + $0x688] sm:$0xff] %v1145_v31  ;;  %v1162_v45 = vadd.f32 %v3413_v11, %v4624_v36  ;;  %v1163_v37 = vadd.f32 %v3413_v11, %v4625_v13  ;;  %v4626_v38 = vld [vmem:[#allocation229_spill] sm:$0xff]  ;;  %v4627_v8 = vld [vmem:[#allocation230_spill] sm:$0xff] }
 0x17d   :  { %1470 = vst [vmem:[#allocation12 + $0x690] sm:$0xff] %v1146_v18  ;;  %1471 = vst [vmem:[#allocation12 + $0x698] sm:$0xff] %v1147_v44  ;;  %v1164_v46 = vadd.f32 %v3413_v11, %v4626_v38  ;;  %v1165_v47 = vadd.f32 %v3413_v11, %v4627_v8  ;;  %v4628_v59 = vld [vmem:[#allocation231_spill] sm:$0xff]  ;;  %v4629_v61 = vld [vmem:[#allocation232_spill] sm:$0xff] }
 0x17e   :  { %1472 = vst [vmem:[#allocation12 + $0x6a0] sm:$0xff] %v1148_v32  ;;  %1473 = vst [vmem:[#allocation12 + $0x6a8] sm:$0xff] %v1149_v25  ;;  %v1166_v50 = vadd.f32 %v3413_v11, %v4628_v59  ;;  %v1167_v14 = vadd.f32 %v3413_v11, %v4629_v61  ;;  %v4630_v33 = vld [vmem:[#allocation233_spill] sm:$0xff]  ;;  %v4631_v6 = vld [vmem:[#allocation234_spill] sm:$0xff] }
 0x17f   :  { %1474 = vst [vmem:[#allocation12 + $0x6b0] sm:$0xff] %v1150_v21  ;;  %1475 = vst [vmem:[#allocation12 + $0x6b8] sm:$0xff] %v1151_v49  ;;  %v1168_v34 = vadd.f32 %v3413_v11, %v4630_v33  ;;  %v1169_v7 = vadd.f32 %v3413_v11, %v4631_v6  ;;  %v4632_v35 = vld [vmem:[#allocation21_spill] sm:$0xff]  ;;  %v4633_v16 = vld [vmem:[#allocation22_spill] sm:$0xff] }
 0x180   :  { %1476 = vst [vmem:[#allocation12 + $0x6c0] sm:$0xff] %v1152_v0  ;;  %1477 = vst [vmem:[#allocation12 + $0x6c8] sm:$0xff] %v1153_v55  ;;  %v1170_v15 = vadd.f32 %v3413_v11, %v4632_v35  ;;  %v1171_v4 = vadd.f32 %v3413_v11, %v4633_v16  ;;  %v4634_v30 = vld [vmem:[#allocation23_spill] sm:$0xff]  ;;  %v4636_v18 = vld [vmem:[#allocation236_spill] sm:$0xff] }
 0x181   :  { %1478 = vst [vmem:[#allocation12 + $0x6d0] sm:$0xff] %v1154_v39  ;;  %1479 = vst [vmem:[#allocation12 + $0x6d8] sm:$0xff] %v1155_v2  ;;  %v1172_v62 = vadd.f32 %v3413_v11, %v4634_v30  ;;  %v4635_v31 = vld [vmem:[#allocation235_spill] sm:$0xff]  ;;  %v1174_v43 = vadd.f32 %v3413_v11, %v4636_v18  ;;  %v4637_v44 = vld [vmem:[#allocation237_spill] sm:$0xff] }
 0x182   :  { %1480 = vst [vmem:[#allocation12 + $0x6e0] sm:$0xff] %v1156_v40  ;;  %1481 = vst [vmem:[#allocation12 + $0x6e8] sm:$0xff] %v1157_v41  ;;  %v1173_v42 = vadd.f32 %v3413_v11, %v4635_v31  ;;  %v1175_v32 = vadd.f32 %v3413_v11, %v4637_v44  ;;  %v4638_v24 = vld [vmem:[#allocation238_spill] sm:$0xff]  ;;  %v4639_v17 = vld [vmem:[#allocation239_spill] sm:$0xff] }
 0x183   :  { %1482 = vst [vmem:[#allocation12 + $0x6f0] sm:$0xff] %v1158_v29  ;;  %1483 = vst [vmem:[#allocation12 + $0x6f8] sm:$0xff] %v1159_v56  ;;  %v1176_v25 = vadd.f32 %v3413_v11, %v4638_v24  ;;  %v1177_v21 = vadd.f32 %v3413_v11, %v4639_v17  ;;  %v4640_v26 = vld [vmem:[#allocation240_spill] sm:$0xff]  ;;  %v4641_v22 = vld [vmem:[#allocation241_spill] sm:$0xff]  ;;  %v1203_v24 = vadd.f32 %v3413_v11, %v3184_v27 }
 0x184   :  { %1484 = vst [vmem:[#allocation12 + $0x700] sm:$0xff] %v1160_v19  ;;  %1485 = vst [vmem:[#allocation12 + $0x708] sm:$0xff] %v1161_v12  ;;  %v1178_v49 = vadd.f32 %v3413_v11, %v4640_v26  ;;  %v1179_v0 = vadd.f32 %v3413_v11, %v4641_v22  ;;  %v4642_v1 = vld [vmem:[#allocation242_spill] sm:$0xff]  ;;  %v4643_v48 = vld [vmem:[#allocation243_spill] sm:$0xff] }
 0x185   :  { %1486 = vst [vmem:[#allocation12 + $0x710] sm:$0xff] %v1162_v45  ;;  %1487 = vst [vmem:[#allocation12 + $0x718] sm:$0xff] %v1163_v37  ;;  %v1180_v55 = vadd.f32 %v3413_v11, %v4642_v1  ;;  %v1181_v39 = vadd.f32 %v3413_v11, %v4643_v48  ;;  %v4644_v63 = vld [vmem:[#allocation244_spill] sm:$0xff]  ;;  %v4645_v60 = vld [vmem:[#allocation245_spill] sm:$0xff] }
 0x186   :  { %1488 = vst [vmem:[#allocation12 + $0x720] sm:$0xff] %v1164_v46  ;;  %1489 = vst [vmem:[#allocation12 + $0x728] sm:$0xff] %v1165_v47  ;;  %v1182_v2 = vadd.f32 %v3413_v11, %v4644_v63  ;;  %v1183_v40 = vadd.f32 %v3413_v11, %v4645_v60  ;;  %v4646_v9 = vld [vmem:[#allocation246_spill] sm:$0xff]  ;;  %v4647_v23 = vld [vmem:[#allocation247_spill] sm:$0xff] }
 0x187   :  { %1490 = vst [vmem:[#allocation12 + $0x730] sm:$0xff] %v1166_v50  ;;  %1491 = vst [vmem:[#allocation12 + $0x738] sm:$0xff] %v1167_v14  ;;  %v1184_v41 = vadd.f32 %v3413_v11, %v4646_v9  ;;  %v1185_v29 = vadd.f32 %v3413_v11, %v4647_v23  ;;  %v4648_v28 = vld [vmem:[#allocation248_spill] sm:$0xff]  ;;  %v4649_v10 = vld [vmem:[#allocation249_spill] sm:$0xff] }
 0x188   :  { %1492 = vst [vmem:[#allocation12 + $0x740] sm:$0xff] %v1168_v34  ;;  %1493 = vst [vmem:[#allocation12 + $0x748] sm:$0xff] %v1169_v7  ;;  %v1186_v56 = vadd.f32 %v3413_v11, %v4648_v28  ;;  %v1187_v19 = vadd.f32 %v3413_v11, %v4649_v10  ;;  %v4650_v5 = vld [vmem:[#allocation24_spill] sm:$0xff]  ;;  %v4651_v36 = vld [vmem:[#allocation25_spill] sm:$0xff] }
 0x189   :  { %1494 = vst [vmem:[#allocation12 + $0x750] sm:$0xff] %v1170_v15  ;;  %1495 = vst [vmem:[#allocation12 + $0x758] sm:$0xff] %v1171_v4  ;;  %v1188_v12 = vadd.f32 %v3413_v11, %v4650_v5  ;;  %v1189_v45 = vadd.f32 %v3413_v11, %v4651_v36  ;;  %v4652_v13 = vld [vmem:[#allocation26_spill] sm:$0xff]  ;;  %v4654_v8 = vld [vmem:[#allocation251_spill] sm:$0xff] }
 0x18a   :  { %1496 = vst [vmem:[#allocation12 + $0x760] sm:$0xff] %v1172_v62  ;;  %1497 = vst [vmem:[#allocation12 + $0x768] sm:$0xff] %v1173_v42  ;;  %v1190_v37 = vadd.f32 %v3413_v11, %v4652_v13  ;;  %v4653_v38 = vld [vmem:[#allocation250_spill] sm:$0xff]  ;;  %v1192_v47 = vadd.f32 %v3413_v11, %v4654_v8  ;;  %v4655_v59 = vld [vmem:[#allocation252_spill] sm:$0xff] }
 0x18b   :  { %1498 = vst [vmem:[#allocation12 + $0x770] sm:$0xff] %v1174_v43  ;;  %1499 = vst [vmem:[#allocation12 + $0x778] sm:$0xff] %v1175_v32  ;;  %v1191_v46 = vadd.f32 %v3413_v11, %v4653_v38  ;;  %v1193_v50 = vadd.f32 %v3413_v11, %v4655_v59  ;;  %v4656_v61 = vld [vmem:[#allocation253_spill] sm:$0xff]  ;;  %v4657_v33 = vld [vmem:[#allocation254_spill] sm:$0xff] }
 0x18c   :  { %1500 = vst [vmem:[#allocation12 + $0x780] sm:$0xff] %v1176_v25  ;;  %1501 = vst [vmem:[#allocation12 + $0x788] sm:$0xff] %v1177_v21  ;;  %v1194_v14 = vadd.f32 %v3413_v11, %v4656_v61  ;;  %v1195_v34 = vadd.f32 %v3413_v11, %v4657_v33  ;;  %v4658_v6 = vld [vmem:[#allocation255_spill] sm:$0xff]  ;;  %v4659_v35 = vld [vmem:[#allocation256_spill] sm:$0xff] }
 0x18d   :  { %1502 = vst [vmem:[#allocation12 + $0x790] sm:$0xff] %v1178_v49  ;;  %1503 = vst [vmem:[#allocation12 + $0x798] sm:$0xff] %v1179_v0  ;;  %v1196_v7 = vadd.f32 %v3413_v11, %v4658_v6  ;;  %v1197_v15 = vadd.f32 %v3413_v11, %v4659_v35  ;;  %v4660_v16 = vld [vmem:[#allocation257_spill] sm:$0xff]  ;;  %v4661_v30 = vld [vmem:[#allocation258_spill] sm:$0xff] }
 0x18e   :  { %1504 = vst [vmem:[#allocation12 + $0x7a0] sm:$0xff] %v1180_v55  ;;  %1505 = vst [vmem:[#allocation12 + $0x7a8] sm:$0xff] %v1181_v39  ;;  %v1198_v4 = vadd.f32 %v3413_v11, %v4660_v16  ;;  %v1199_v62 = vadd.f32 %v3413_v11, %v4661_v30  ;;  %v4662_v31 = vld [vmem:[#allocation259_spill] sm:$0xff]  ;;  %v4663_v18 = vld [vmem:[#allocation260_spill] sm:$0xff] }
 0x18f   :  { %1506 = vst [vmem:[#allocation12 + $0x7b0] sm:$0xff] %v1182_v2  ;;  %1507 = vst [vmem:[#allocation12 + $0x7b8] sm:$0xff] %v1183_v40  ;;  %v1200_v42 = vadd.f32 %v3413_v11, %v4662_v31  ;;  %v1201_v43 = vadd.f32 %v3413_v11, %v4663_v18  ;;  %v4664_v44 = vld [vmem:[#allocation261_spill] sm:$0xff]  ;;  %v4665_v25 = vld [vmem:[#allocation262_spill] sm:$0xff] }
 0x190   :  { %1508 = vst [vmem:[#allocation12 + $0x7c0] sm:$0xff] %v1184_v41  ;;  %1509 = vst [vmem:[#allocation12 + $0x7c8] sm:$0xff] %v1185_v29  ;;  %v1202_v32 = vadd.f32 %v3413_v11, %v4664_v44  ;;  %v1204_v17 = vadd.f32 %v3413_v11, %v4665_v25  ;;  %v4666_v21 = vld [vmem:[#allocation263_spill] sm:$0xff]  ;;  %v4668_v0 = vld [vmem:[#allocation28_spill] sm:$0xff] }
 0x191   :  { %1510 = vst [vmem:[#allocation12 + $0x7d0] sm:$0xff] %v1186_v56  ;;  %1511 = vst [vmem:[#allocation12 + $0x7d8] sm:$0xff] %v1187_v19  ;;  %v1205_v26 = vadd.f32 %v3413_v11, %v4666_v21  ;;  %v4667_v49 = vld [vmem:[#allocation27_spill] sm:$0xff]  ;;  %v1207_v1 = vadd.f32 %v3413_v11, %v4668_v0  ;;  %v4669_v55 = vld [vmem:[#allocation29_spill] sm:$0xff] }
 0x192   :  { %1512 = vst [vmem:[#allocation12 + $0x7e0] sm:$0xff] %v1188_v12  ;;  %1513 = vst [vmem:[#allocation12 + $0x7e8] sm:$0xff] %v1189_v45  ;;  %v1206_v22 = vadd.f32 %v3413_v11, %v4667_v49  ;;  %v1208_v48 = vadd.f32 %v3413_v11, %v4669_v55  ;;  %v4670_v27 = vld [vmem:[#allocation264_spill] sm:$0xff]  ;;  %v4671_v63 = vld [vmem:[#allocation265_spill] sm:$0xff] }
 0x193   :  { %1514 = vst [vmem:[#allocation12 + $0x7f0] sm:$0xff] %v1190_v37  ;;  %1515 = vst [vmem:[#allocation12 + $0x7f8] sm:$0xff] %v1191_v46  ;;  %v1209_v39 = vadd.f32 %v3413_v11, %v4670_v27  ;;  %v1210_v2 = vadd.f32 %v3413_v11, %v4671_v63  ;;  %v4672_v60 = vld [vmem:[#allocation266_spill] sm:$0xff]  ;;  %v4673_v9 = vld [vmem:[#allocation267_spill] sm:$0xff] }
 0x194   :  { %1516 = vst [vmem:[#allocation12 + $0x800] sm:$0xff] %v1192_v47  ;;  %1517 = vst [vmem:[#allocation12 + $0x808] sm:$0xff] %v1193_v50  ;;  %v1211_v40 = vadd.f32 %v3413_v11, %v4672_v60  ;;  %v1212_v41 = vadd.f32 %v3413_v11, %v4673_v9  ;;  %v4674_v23 = vld [vmem:[#allocation268_spill] sm:$0xff]  ;;  %v4675_v28 = vld [vmem:[#allocation269_spill] sm:$0xff]  ;;  %v1240_v9 = vadd.f32 %v3413_v11, %v3334_v20 }
 0x195   :  { %1518 = vst [vmem:[#allocation12 + $0x810] sm:$0xff] %v1194_v14  ;;  %1519 = vst [vmem:[#allocation12 + $0x818] sm:$0xff] %v1195_v34  ;;  %v1213_v29 = vadd.f32 %v3413_v11, %v4674_v23  ;;  %v1214_v56 = vadd.f32 %v3413_v11, %v4675_v28  ;;  %v4676_v10 = vld [vmem:[#allocation270_spill] sm:$0xff]  ;;  %v4677_v5 = vld [vmem:[#allocation271_spill] sm:$0xff]  ;;  %v1242_v23 = vadd.f32 %v3413_v11, %v3342_v54 }
 0x196   :  { %1520 = vst [vmem:[#allocation12 + $0x820] sm:$0xff] %v1196_v7  ;;  %1521 = vst [vmem:[#allocation12 + $0x828] sm:$0xff] %v1197_v15  ;;  %v1215_v19 = vadd.f32 %v3413_v11, %v4676_v10  ;;  %v1216_v12 = vadd.f32 %v3413_v11, %v4677_v5  ;;  %v4678_v36 = vld [vmem:[#allocation272_spill] sm:$0xff]  ;;  %v4679_v13 = vld [vmem:[#allocation273_spill] sm:$0xff]  ;;  %v1244_v28 = vadd.f32 %v3413_v11, %v3350_v58 }
 0x197   :  { %1522 = vst [vmem:[#allocation12 + $0x830] sm:$0xff] %v1198_v4  ;;  %1523 = vst [vmem:[#allocation12 + $0x838] sm:$0xff] %v1199_v62  ;;  %v1217_v45 = vadd.f32 %v3413_v11, %v4678_v36  ;;  %v1218_v37 = vadd.f32 %v3413_v11, %v4679_v13  ;;  %v4680_v38 = vld [vmem:[#allocation274_spill] sm:$0xff]  ;;  %v4681_v8 = vld [vmem:[#allocation275_spill] sm:$0xff]  ;;  %v1246_v20 = vadd.f32 %v3413_v11, %v3358_v53 }
 0x198   :  { %1524 = vst [vmem:[#allocation12 + $0x840] sm:$0xff] %v1200_v42  ;;  %1525 = vst [vmem:[#allocation12 + $0x848] sm:$0xff] %v1201_v43  ;;  %v1219_v46 = vadd.f32 %v3413_v11, %v4680_v38  ;;  %v1220_v47 = vadd.f32 %v3413_v11, %v4681_v8  ;;  %v4682_v59 = vld [vmem:[#allocation276_spill] sm:$0xff]  ;;  %v4683_v61 = vld [vmem:[#allocation277_spill] sm:$0xff] }
 0x199   :  { %1526 = vst [vmem:[#allocation12 + $0x850] sm:$0xff] %v1202_v32  ;;  %1527 = vst [vmem:[#allocation12 + $0x858] sm:$0xff] %v1203_v24  ;;  %v1221_v50 = vadd.f32 %v3413_v11, %v4682_v59  ;;  %v1222_v14 = vadd.f32 %v3413_v11, %v4683_v61  ;;  %v4684_v33 = vld [vmem:[#allocation278_spill] sm:$0xff]  ;;  %v4686_v35 = vld [vmem:[#allocation279_spill] sm:$0xff] }
 0x19a   :  { %1528 = vst [vmem:[#allocation12 + $0x860] sm:$0xff] %v1204_v17  ;;  %1529 = vst [vmem:[#allocation12 + $0x868] sm:$0xff] %v1205_v26  ;;  %v1223_v34 = vadd.f32 %v3413_v11, %v4684_v33  ;;  %v4685_v6 = vld [vmem:[#allocation30_spill] sm:$0xff]  ;;  %v1225_v15 = vadd.f32 %v3413_v11, %v4686_v35  ;;  %v4687_v16 = vld [vmem:[#allocation31_spill] sm:$0xff] }
 0x19b   :  { %1530 = vst [vmem:[#allocation12 + $0x870] sm:$0xff] %v1206_v22  ;;  %1531 = vst [vmem:[#allocation12 + $0x878] sm:$0xff] %v1207_v1  ;;  %v1224_v7 = vadd.f32 %v3413_v11, %v4685_v6  ;;  %v1226_v4 = vadd.f32 %v3413_v11, %v4687_v16  ;;  %v4688_v30 = vld [vmem:[#allocation280_spill] sm:$0xff]  ;;  %v4689_v31 = vld [vmem:[#allocation281_spill] sm:$0xff] }
 0x19c   :  { %1532 = vst [vmem:[#allocation12 + $0x880] sm:$0xff] %v1208_v48  ;;  %1533 = vst [vmem:[#allocation12 + $0x888] sm:$0xff] %v1209_v39  ;;  %v1227_v62 = vadd.f32 %v3413_v11, %v4688_v30  ;;  %v1228_v42 = vadd.f32 %v3413_v11, %v4689_v31  ;;  %v4690_v18 = vld [vmem:[#allocation282_spill] sm:$0xff]  ;;  %v4691_v44 = vld [vmem:[#allocation283_spill] sm:$0xff] }
 0x19d   :  { %1534 = vst [vmem:[#allocation12 + $0x890] sm:$0xff] %v1210_v2  ;;  %1535 = vst [vmem:[#allocation12 + $0x898] sm:$0xff] %v1211_v40  ;;  %v1229_v43 = vadd.f32 %v3413_v11, %v4690_v18  ;;  %v1230_v32 = vadd.f32 %v3413_v11, %v4691_v44  ;;  %v4692_v24 = vld [vmem:[#allocation284_spill] sm:$0xff]  ;;  %v4693_v17 = vld [vmem:[#allocation285_spill] sm:$0xff]  ;;  %v1239_v40 = vadd.f32 %v3413_v11, %v3330_v52 }
 0x19e   :  { %1536 = vst [vmem:[#allocation12 + $0x8a0] sm:$0xff] %v1212_v41  ;;  %1537 = vst [vmem:[#allocation12 + $0x8a8] sm:$0xff] %v1213_v29  ;;  %v1231_v25 = vadd.f32 %v3413_v11, %v4692_v24  ;;  %v1232_v21 = vadd.f32 %v3413_v11, %v4693_v17  ;;  %v4694_v26 = vld [vmem:[#allocation286_spill] sm:$0xff]  ;;  %v4695_v22 = vld [vmem:[#allocation287_spill] sm:$0xff]  ;;  %v1241_v41 = vadd.f32 %v3413_v11, %v3338_v51 }
 0x19f   :  { %1538 = vst [vmem:[#allocation12 + $0x8b0] sm:$0xff] %v1214_v56  ;;  %1539 = vst [vmem:[#allocation12 + $0x8b8] sm:$0xff] %v1215_v19  ;;  %v1233_v49 = vadd.f32 %v3413_v11, %v4694_v26  ;;  %v1234_v0 = vadd.f32 %v3413_v11, %v4695_v22  ;;  %v4696_v1 = vld [vmem:[#allocation288_spill] sm:$0xff]  ;;  %v4697_v48 = vld [vmem:[#allocation289_spill] sm:$0xff]  ;;  %v1243_v29 = vadd.f32 %v3413_v11, %v3346_v57 }
 0x1a0   :  { %1540 = vst [vmem:[#allocation12 + $0x8c0] sm:$0xff] %v1216_v12  ;;  %1541 = vst [vmem:[#allocation12 + $0x8c8] sm:$0xff] %v1217_v45  ;;  %v1235_v55 = vadd.f32 %v3413_v11, %v4696_v1  ;;  %v1236_v27 = vadd.f32 %v3413_v11, %v4697_v48  ;;  %v4698_v39 = vld [vmem:[#allocation290_spill] sm:$0xff]  ;;  %v4699_v2 = vld [vmem:[#allocation291_spill] sm:$0xff]  ;;  %v1245_v52 = vadd.f32 %v3413_v11, %v3354_v3 }
 0x1a1   :  { %1542 = vst [vmem:[#allocation12 + $0x8d0] sm:$0xff] %v1218_v37  ;;  %1543 = vst [vmem:[#allocation12 + $0x8d8] sm:$0xff] %v1219_v46  ;;  %v1237_v63 = vadd.f32 %v3413_v11, %v4698_v39  ;;  %v1238_v60 = vadd.f32 %v3413_v11, %v4699_v2  ;;  %v4700_v51 = vld [vmem:[#allocation32_spill] sm:$0xff]  ;;  %v4701_v56 = vld [vmem:[#allocation33_spill] sm:$0xff] }
 0x1a2   :  { %1544 = vst [vmem:[#allocation12 + $0x8e0] sm:$0xff] %v1220_v47  ;;  %1545 = vst [vmem:[#allocation12 + $0x8e8] sm:$0xff] %v1221_v50  ;;  %v1247_v54 = vadd.f32 %v3413_v11, %v4700_v51  ;;  %v1248_v10 = vadd.f32 %v3413_v11, %v4701_v56  ;;  %v4702_v57 = vld [vmem:[#allocation34_spill] sm:$0xff]  ;;  %v4703_v58 = vld [vmem:[#allocation292_spill] sm:$0xff] }
 0x1a3   :  { %1546 = vst [vmem:[#allocation12 + $0x8f0] sm:$0xff] %v1222_v14  ;;  %1547 = vst [vmem:[#allocation12 + $0x8f8] sm:$0xff] %v1223_v34  ;;  %v1249_v19 = vadd.f32 %v3413_v11, %v4702_v57  ;;  %v1250_v5 = vadd.f32 %v3413_v11, %v4703_v58  ;;  %v4704_v3 = vld [vmem:[#allocation293_spill] sm:$0xff]  ;;  %v4705_v12 = vld [vmem:[#allocation294_spill] sm:$0xff] }
 0x1a4   :  { %1548 = vst [vmem:[#allocation12 + $0x900] sm:$0xff] %v1224_v7  ;;  %1549 = vst [vmem:[#allocation12 + $0x908] sm:$0xff] %v1225_v15  ;;  %v1251_v53 = vadd.f32 %v3413_v11, %v4704_v3  ;;  %v1252_v36 = vadd.f32 %v3413_v11, %v4705_v12  ;;  %v4706_v45 = vld [vmem:[#allocation295_spill] sm:$0xff]  ;;  %v4707_v37 = vld [vmem:[#allocation296_spill] sm:$0xff] }
 0x1a5   :  { %1550 = vst [vmem:[#allocation12 + $0x910] sm:$0xff] %v1226_v4  ;;  %1551 = vst [vmem:[#allocation12 + $0x918] sm:$0xff] %v1227_v62  ;;  %v1253_v13 = vadd.f32 %v3413_v11, %v4706_v45  ;;  %v1254_v38 = vadd.f32 %v3413_v11, %v4707_v37  ;;  %v4708_v46 = vld [vmem:[#allocation297_spill] sm:$0xff]  ;;  %v4709_v47 = vld [vmem:[#allocation298_spill] sm:$0xff] }
 0x1a6   :  { %1552 = vst [vmem:[#allocation12 + $0x920] sm:$0xff] %v1228_v42  ;;  %1553 = vst [vmem:[#allocation12 + $0x928] sm:$0xff] %v1229_v43  ;;  %v1255_v8 = vadd.f32 %v3413_v11, %v4708_v46  ;;  %v1256_v59 = vadd.f32 %v3413_v11, %v4709_v47  ;;  %v4710_v50 = vld [vmem:[#allocation299_spill] sm:$0xff]  ;;  %v4711_v14 = vld [vmem:[#allocation300_spill] sm:$0xff] }
 0x1a7   :  { %1554 = vst [vmem:[#allocation12 + $0x930] sm:$0xff] %v1230_v32  ;;  %1555 = vst [vmem:[#allocation12 + $0x938] sm:$0xff] %v1231_v25  ;;  %v1257_v61 = vadd.f32 %v3413_v11, %v4710_v50  ;;  %v1258_v33 = vadd.f32 %v3413_v11, %v4711_v14  ;;  %v4712_v34 = vld [vmem:[#allocation301_spill] sm:$0xff] }
 0x1a8   :  { %1556 = vst [vmem:[#allocation12 + $0x940] sm:$0xff] %v1232_v21  ;;  %1557 = vst [vmem:[#allocation12 + $0x948] sm:$0xff] %v1233_v49  ;;  %v1259_v6 = vadd.f32 %v3413_v11, %v4712_v34 }
 0x1a9   :  { %1558 = vst [vmem:[#allocation12 + $0x950] sm:$0xff] %v1234_v0  ;;  %1559 = vst [vmem:[#allocation12 + $0x958] sm:$0xff] %v1235_v55 }
 0x1aa   :  { %1560 = vst [vmem:[#allocation12 + $0x960] sm:$0xff] %v1236_v27  ;;  %1561 = vst [vmem:[#allocation12 + $0x968] sm:$0xff] %v1237_v63 }
 0x1ab   :  { %1562 = vst [vmem:[#allocation12 + $0x970] sm:$0xff] %v1238_v60  ;;  %1563 = vst [vmem:[#allocation12 + $0x978] sm:$0xff] %v1239_v40 }
 0x1ac   :  { %1564 = vst [vmem:[#allocation12 + $0x980] sm:$0xff] %v1240_v9  ;;  %1565 = vst [vmem:[#allocation12 + $0x988] sm:$0xff] %v1241_v41 }
 0x1ad   :  { %1566 = vst [vmem:[#allocation12 + $0x990] sm:$0xff] %v1242_v23  ;;  %1567 = vst [vmem:[#allocation12 + $0x998] sm:$0xff] %v1243_v29 }
 0x1ae   :  { %1568 = vst [vmem:[#allocation12 + $0x9a0] sm:$0xff] %v1244_v28  ;;  %1569 = vst [vmem:[#allocation12 + $0x9a8] sm:$0xff] %v1245_v52 }
 0x1af   :  { %1570 = vst [vmem:[#allocation12 + $0x9b0] sm:$0xff] %v1246_v20  ;;  %1571 = vst [vmem:[#allocation12 + $0x9b8] sm:$0xff] %v1247_v54 }
 0x1b0   :  { %1572 = vst [vmem:[#allocation12 + $0x9c0] sm:$0xff] %v1248_v10  ;;  %1573 = vst [vmem:[#allocation12 + $0x9c8] sm:$0xff] %v1249_v19 }
 0x1b1   :  { %1574 = vst [vmem:[#allocation12 + $0x9d0] sm:$0xff] %v1250_v5  ;;  %1575 = vst [vmem:[#allocation12 + $0x9d8] sm:$0xff] %v1251_v53 }
 0x1b2   :  { %1576 = vst [vmem:[#allocation12 + $0x9e0] sm:$0xff] %v1252_v36  ;;  %1577 = vst [vmem:[#allocation12 + $0x9e8] sm:$0xff] %v1253_v13 }
 0x1b3   :  { %1578 = vst [vmem:[#allocation12 + $0x9f0] sm:$0xff] %v1254_v38  ;;  %1579 = vst [vmem:[#allocation12 + $0x9f8] sm:$0xff] %v1255_v8 }
 0x1b4   :  { %1580 = vst [vmem:[#allocation12 + $0xa00] sm:$0xff] %v1256_v59  ;;  %1581 = vst [vmem:[#allocation12 + $0xa08] sm:$0xff] %v1257_v61 }
 0x1b5   :  { %1582 = vst [vmem:[#allocation12 + $0xa10] sm:$0xff] %v1258_v33  ;;  %1583 = vst [vmem:[#allocation12 + $0xa18] sm:$0xff] %v1259_v6 }
 0x1b6   :  { %1770 = shalt.err (!%p1767_p5)
}
 0x1b7   :  { %s1771_s21 = scalar_lea.hbm %s4106_s5, 41472 }
 0x1b8   :  { %p1772_p6 = scmp.ne.s32.totalorder %s4106_s5, %s1771_s21  ;;  %p1775_p7 = scmp.lt.u32.totalorder %s1771_s21, %s4106_s5 }
 0x1ba   :  { %p1777_p8 = pnand %p1775_p7, %p1772_p6 }
 0x1bc   :  { %1780 = shalt.err (!%p1777_p8)
}
 0x1bd   :  { %1595 = dma.vmem_to_hbm [thread:$0]  %s1590_s18, 41472, %s4106_s5, [#allocation4], %s1797_s1, %s1797_s1, %s1798_s24  }
 0x1be   :  { %1789 = dma.done.wait [#allocation4], 41472  }
 0x1bf   :  { %1790 = vsyncadd [#allocation4], 4294925824 }
 0x1c0   :  { %1791 = dma.done.wait [#allocation14], 16  }
 0x1c1   :  { %1792 = vsyncadd [#allocation14], 4294967280 }
 0x1c2   :  { %1612 = vsyncpa [#allocation3], 1 }
 0x1c3   :  { %1613 = vsyncpa [#allocation8], 1 }
 0x1c4   :  { %1614 = vsyncpa [#allocation11], 1 }
 0x1c5   :  { %1615 = vsyncpa [#allocation4], 1 }
 0x1c6   :  { %1616 = vsyncpa [#allocation14], 1 }
 0x1c7   :  { %1617 = vsyncpa [#allocation5], 1 }

</bundles_post_ra>
